<compile_context>
chip_gen: v7x
topology: tpu7x:2x2x1
jax: 0.10.0
libtpu: 0.0.40
codegen_flags: <defaults>
</compile_context>

<pallas_src>
import functools

import jax
import jax.numpy as jnp
from jax.experimental import pallas as pl
from jax.experimental.pallas import tpu as pltpu

EMB = 64
CONS_NFEATS = 10
EDGE_NFEATS = 2
VAR_NFEATS = 104
LANE = 128            # TPU lane width; first-layer feature dims padded to this
ROW_MULT = 16         # bf16 sublane packing -> row counts padded to multiples of 16
MATMUL_DTYPE = jnp.bfloat16
VMEM_LIMIT_BYTES = 32 * 1024 * 1024   # explicit scoped-VMEM request (safe on v5e/v6e/v7x)


# --------------------------------------------------------------------------
# Pallas kernels
# --------------------------------------------------------------------------
def _embed_kernel(x_ref, w1_ref, b1_ref, w2_ref, b2_ref, o_ref):
  """Node embedding MLP: relu(relu(x @ w1 + b1) @ w2 + b2).

  x and w1 stay f32 (raw feature dynamic range); second matmul bf16 operands,
  f32 accumulation."""
  h = jnp.dot(x_ref[...], w1_ref[...],
              preferred_element_type=jnp.float32) + b1_ref[...]
  h = jnp.maximum(h, 0.0)
  h = jnp.dot(h.astype(w2_ref.dtype), w2_ref[...],
              preferred_element_type=jnp.float32) + b2_ref[...]
  o_ref[...] = jnp.maximum(h, 0.0).astype(o_ref.dtype)


def _edge_msg_kernel(nfi_ref, nfj_ref, ef_ref, wl_ref, wr_ref, we_ref, bj_ref,
                     wf_ref, bf_ref, o_ref, *, n_edges, block_rows):
  """Per-edge joint transform + message:

      joint = nf_i @ wl' + nf_j @ wr' + raw_e @ we' + bj'      (scales folded)
      msg   = relu(joint) @ wf + bf
      msg[row >= n_edges] = 0                                   (padded-edge mask)

  The raw [block,2] edge features contribute via two broadcast FMAs on the VPU
  instead of a zero-padded K=64 matmul operand."""
  acc = jnp.dot(nfi_ref[...], wl_ref[...], preferred_element_type=jnp.float32)
  acc = acc + jnp.dot(nfj_ref[...], wr_ref[...],
                      preferred_element_type=jnp.float32)
  ef = ef_ref[...]                                   # [block, 2]  f32
  we = we_ref[...]                                   # [2, EMB]    f32
  acc = acc + ef[:, 0:1] * we[0:1, :]
  acc = acc + ef[:, 1:2] * we[1:2, :]
  acc = acc + bj_ref[...]
  h = jnp.maximum(acc, 0.0)
  msg = jnp.dot(h.astype(wf_ref.dtype), wf_ref[...],
                preferred_element_type=jnp.float32) + bf_ref[...]
  # Mask rows belonging to edge padding in-register (replaces the wrapper-side
  # e_valid pass; preserves the "padded edges contribute zero" invariant).
  row0 = pl.program_id(0) * block_rows
  rows = jax.lax.broadcasted_iota(jnp.int32, msg.shape, 0) + row0
  msg = jnp.where(rows < n_edges, msg, 0.0)
  o_ref[...] = msg


def _conv_out_kernel(agg_ref, right_ref, wo1a_ref, wo1b_ref, bo1_ref,
                     wo2_ref, bo2_ref, o_ref):
  """Conv output module on split inputs (no [N,128] concat buffer):

      h = relu(agg @ wo1a' + right @ wo1b + bo1)      (pscale folded into wo1a)
      y = h @ wo2 + bo2
  """
  h = jnp.dot(agg_ref[...].astype(wo1a_ref.dtype), wo1a_ref[...],
              preferred_element_type=jnp.float32)
  h = h + jnp.dot(right_ref[...], wo1b_ref[...],
                  preferred_element_type=jnp.float32)
  h = jnp.maximum(h + bo1_ref[...], 0.0)
  y = jnp.dot(h.astype(wo2_ref.dtype), wo2_ref[...],
              preferred_element_type=jnp.float32) + bo2_ref[...]
  o_ref[...] = y.astype(o_ref.dtype)


def _conv_out_head_kernel(agg_ref, right_ref, wo1a_ref, wo1b_ref, bo1_ref,
                          wo2_ref, bo2_ref, hw1_ref, hb1_ref, hw2_ref, o_ref):
  """conv_c_to_v output module + policy head, fused (lane-dense 128-wide store):

      v = relu(agg @ wo1a' + right @ wo1b + bo1) @ wo2 + bo2
      y = relu(v @ hw1 + hb1) @ hw2        (hw2 zero-padded to 128 output lanes)
  """
  h = jnp.dot(agg_ref[...].astype(wo1a_ref.dtype), wo1a_ref[...],
              preferred_element_type=jnp.float32)
  h = h + jnp.dot(right_ref[...], wo1b_ref[...],
                  preferred_element_type=jnp.float32)
  h = jnp.maximum(h + bo1_ref[...], 0.0)
  v = jnp.dot(h.astype(wo2_ref.dtype), wo2_ref[...],
              preferred_element_type=jnp.float32) + bo2_ref[...]
  z = jnp.maximum(
      jnp.dot(v.astype(hw1_ref.dtype), hw1_ref[...],
              preferred_element_type=jnp.float32) + hb1_ref[...], 0.0)
  o_ref[...] = jnp.dot(z.astype(hw2_ref.dtype), hw2_ref[...],
                       preferred_element_type=jnp.float32).astype(o_ref.dtype)


# --------------------------------------------------------------------------
# Row-tiled pallas_call wrapper
# --------------------------------------------------------------------------
def _round_up(x, m):
  return (x + m - 1) // m * m


def _row_tiling(n_rows, max_block):
  """Returns (padded_rows, block_rows); both multiples of ROW_MULT.

  Note (v7x): at production sizes the grids have many steps so the 'parallel'
  axis divides across both TensorCores; tiny inputs collapse to a single block."""
  assert max_block % ROW_MULT == 0
  r = _round_up(max(n_rows, ROW_MULT), ROW_MULT)
  if r <= max_block:
    return r, r
  return _round_up(n_rows, max_block), max_block


def _pad2d(x, rows, cols):
  r, c = x.shape
  return jnp.pad(x, ((0, rows - r), (0, cols - c)))


def _row_call(kernel, row_inputs, weights, out_cols, out_dtype, block_rows, *,
              flops):
  """Grid over the (shared) row axis of `row_inputs` (parallel); weights are
  whole-array constant blocks."""
  rows = row_inputs[0].shape[0]
  in_specs = [pl.BlockSpec((block_rows, x.shape[1]), lambda i: (i, 0))
              for x in row_inputs]
  in_specs += [pl.BlockSpec(w.shape, lambda i: (0, 0)) for w in weights]
  bytes_accessed = sum(int(a.size) * a.dtype.itemsize
                       for a in (*row_inputs, *weights))
  bytes_accessed += rows * out_cols * jnp.dtype(out_dtype).itemsize
  return pl.pallas_call(
      kernel,
      out_shape=jax.ShapeDtypeStruct((rows, out_cols), out_dtype),
      grid=(rows // block_rows,),
      in_specs=in_specs,
      out_specs=pl.BlockSpec((block_rows, out_cols), lambda i: (i, 0)),
      compiler_params=pltpu.CompilerParams(
          dimension_semantics=("parallel",),
          vmem_limit_bytes=VMEM_LIMIT_BYTES),
      cost_estimate=pl.CostEstimate(flops=int(flops), transcendentals=0,
                                    bytes_accessed=int(bytes_accessed)),
  )(*row_inputs, *weights)


# --------------------------------------------------------------------------
# Parameters (same structure / init as the PyTorch module)
# --------------------------------------------------------------------------
def init_params(key):
  keys = iter(jax.random.split(key, 64))

  def orth(in_d, out_d):
    a = jax.random.normal(next(keys), (max(in_d, out_d), min(in_d, out_d)),
                          jnp.float32)
    q, _ = jnp.linalg.qr(a)
    if in_d >= out_d:
      return q[:in_d, :out_d]
    return q[:out_d, :in_d].T  # [in, out]

  def nrm(shape):
    return jax.random.normal(next(keys), shape, jnp.float32)

  p = {}
  # cons_embedding
  p['cons_shift'] = jnp.zeros((1, CONS_NFEATS), jnp.float32)
  p['cons_scale'] = jnp.ones((1, CONS_NFEATS), jnp.float32)
  p['cons_w1'] = orth(CONS_NFEATS, EMB); p['cons_b1'] = nrm((1, EMB))
  p['cons_w2'] = orth(EMB, EMB);         p['cons_b2'] = nrm((1, EMB))
  # edge_embedding
  p['edge_shift'] = jnp.zeros((1, EDGE_NFEATS), jnp.float32)
  p['edge_scale'] = jnp.ones((1, EDGE_NFEATS), jnp.float32)
  p['edge_w'] = orth(EDGE_NFEATS, EMB);  p['edge_b'] = nrm((1, EMB))
  # var_embedding (Prenorm preserve_features=[2] -> identity on that column,
  # which shift=0 / scale=1 already gives at construction time)
  p['var_shift'] = jnp.zeros((1, VAR_NFEATS), jnp.float32)
  p['var_scale'] = jnp.ones((1, VAR_NFEATS), jnp.float32)
  p['var_w1'] = orth(VAR_NFEATS, EMB);   p['var_b1'] = nrm((1, EMB))
  p['var_w2'] = orth(EMB, EMB);          p['var_b2'] = nrm((1, EMB))

  def conv_params():
    return dict(
        wl=orth(EMB, EMB), bl=nrm((1, EMB)),
        we=orth(EMB, EMB),                       # no bias
        wr=orth(EMB, EMB),                       # no bias
        fscale=jnp.ones((1, EMB), jnp.float32),  # feature Prenorm(shift=False)
        wf=orth(EMB, EMB), bf=nrm((1, EMB)),
        pscale=jnp.ones((1, EMB), jnp.float32),  # post_conv Prenorm(shift=False)
        wo1=orth(2 * EMB, EMB), bo1=nrm((1, EMB)),
        wo2=orth(EMB, EMB), bo2=nrm((1, EMB)),
    )

  p['conv_v_to_c'] = conv_params()
  p['conv_c_to_v'] = conv_params()
  # policy output head
  p['out_w1'] = orth(EMB, EMB); p['out_b1'] = nrm((1, EMB))
  p['out_w2'] = orth(EMB, 1)                      # no bias
  return p


def prepare_params(p, dtype=MATMUL_DTYPE):
  """Fold prenorms / scales into weights, pack & pad, cast matmul weights.

  Call ONCE at parameter-load time (outside jit)."""
  f32 = jnp.float32

  def fold_embed(shift, scale, w1, b1, w2, b2, nfeats):
    # (x - shift) * scale folded into the first linear.  Exact fold: the scale
    # multiplies weight rows before the matmul, not across a ReLU.
    w1f = scale.reshape(-1, 1) * w1
    b1f = b1 - (shift * scale) @ w1
    w1p = jnp.zeros((LANE, EMB), f32).at[:nfeats].set(w1f)
    return dict(w1=w1p.astype(f32), b1=b1f.astype(f32),
                w2=w2.astype(dtype), b2=b2.astype(f32))

  kp = {'cons': fold_embed(p['cons_shift'], p['cons_scale'], p['cons_w1'],
                           p['cons_b1'], p['cons_w2'], p['cons_b2'],
                           CONS_NFEATS),
        'var': fold_embed(p['var_shift'], p['var_scale'], p['var_w1'],
                          p['var_b1'], p['var_w2'], p['var_b2'], VAR_NFEATS)}

  # edge prenorm + Linear(2, 64), composed with each conv's `we`
  ew = p['edge_scale'].reshape(-1, 1) * p['edge_w']                     # (2, 64)
  eb = p['edge_b'] - (p['edge_shift'] * p['edge_scale']) @ p['edge_w']  # (1, 64)

  def fold_conv(cp):
    s = cp['fscale']       # folded into output columns pre-ReLU -> sign-exact
    return dict(
        wl=(cp['wl'] * s).astype(dtype),                     # (64, 64)
        wr=(cp['wr'] * s).astype(dtype),                     # (64, 64)
        we=((ew @ cp['we']) * s).astype(f32),                # (2, 64) raw-edge weight
        bj=((cp['bl'] + eb @ cp['we']) * s).astype(f32),     # (1, 64)
        wf=cp['wf'].astype(dtype), bf=cp['bf'].astype(f32),
        # output module wo1 split into its two 64-row halves; pscale folded into
        # the agg half (scales rows before the matmul -> sign-exact)
        wo1a=(cp['pscale'].reshape(-1, 1) * cp['wo1'][:EMB]).astype(dtype),
        wo1b=cp['wo1'][EMB:].astype(dtype),
        bo1=cp['bo1'].astype(f32),
        wo2=cp['wo2'].astype(dtype), bo2=cp['bo2'].astype(f32))

  kp['conv_v_to_c'] = fold_conv(p['conv_v_to_c'])
  kp['conv_c_to_v'] = fold_conv(p['conv_c_to_v'])

  # policy head; final 64->1 weight padded to 128 lanes (lane-dense store)
  w2p = jnp.zeros((EMB, LANE), f32).at[:, :1].set(p['out_w2'])
  kp['head'] = dict(w1=p['out_w1'].astype(dtype), b1=p['out_b1'].astype(f32),
                    w2=w2p.astype(dtype))
  return kp


# --------------------------------------------------------------------------
# Full forward pass (Pallas kernels + linear-cost index glue)
# --------------------------------------------------------------------------
def gnn_policy_forward(kp, constraint_features, edge_indices, edge_features,
                       variable_features, *, node_block=2048, edge_block=2048,
                       sort_edges=True):
  dt = MATMUL_DTYPE
  n_cons = constraint_features.shape[0]
  n_vars = variable_features.shape[0]
  n_edges = edge_features.shape[0]

  nc_pad, nc_blk = _row_tiling(n_cons, node_block)
  nv_pad, nv_blk = _row_tiling(n_vars, node_block)
  ne_pad, ne_blk = _row_tiling(n_edges, edge_block)

  # ---- node embeddings: raw features stay f32, prenorm folded into padded w1 --
  cons_x = _pad2d(constraint_features, nc_pad, LANE)
  var_x = _pad2d(variable_features, nv_pad, LANE)
  embed_flops = lambda r: 2 * r * (LANE * EMB + EMB * EMB)
  cons_h = _row_call(_embed_kernel, [cons_x],
                     [kp['cons']['w1'], kp['cons']['b1'],
                      kp['cons']['w2'], kp['cons']['b2']],
                     EMB, dt, nc_blk, flops=embed_flops(nc_pad))
  var_h = _row_call(_embed_kernel, [var_x],
                    [kp['var']['w1'], kp['var']['b1'],
                     kp['var']['w2'], kp['var']['b2']],
                    EMB, dt, nv_blk, flops=embed_flops(nv_pad))

  e_cons = edge_indices[0]
  e_var = edge_indices[1]

  def prep_edges(tgt, src, n_right_pad):
    """Sort edges by target (so segment_sum sees sorted ids) and pad.
    Padded target rows point at the last (padding) row; their messages are
    zeroed in-kernel, so they contribute nothing."""
    if sort_edges:
      order = jnp.argsort(tgt)
      tgt_s = jnp.take(tgt, order)
      src_s = jnp.take(src, order)
      ef_s = jnp.take(edge_features, order, axis=0)
    else:
      tgt_s, src_s, ef_s = tgt, src, edge_features
    pad = ne_pad - n_edges
    tgt_p = jnp.pad(tgt_s, (0, pad), constant_values=n_right_pad - 1)
    src_p = jnp.pad(src_s, (0, pad))
    ef_p = jnp.pad(ef_s, ((0, pad), (0, 0)))
    return tgt_p, src_p, ef_p

  edge_flops = 2 * ne_pad * (3 * EMB * EMB + EDGE_NFEATS * EMB)

  def conv_aggregate(ckp, left_h, right_h, tgt_p, src_p, ef_p, n_right_pad):
    """Edge messages (one Pallas kernel: two 64x64 dots + raw-edge FMAs + wf,
    padded-edge mask fused in the epilogue) + sorted scatter-add onto targets."""
    nf_i = jnp.take(right_h, tgt_p, axis=0)                   # [E_pad, 64] bf16
    nf_j = jnp.take(left_h, src_p, axis=0)                    # [E_pad, 64] bf16
    kern = functools.partial(_edge_msg_kernel, n_edges=n_edges,
                             block_rows=ne_blk)
    msg = _row_call(kern, [nf_i, nf_j, ef_p],
                    [ckp['wl'], ckp['wr'], ckp['we'], ckp['bj'],
                     ckp['wf'], ckp['bf']],
                    EMB, jnp.float32, ne_blk, flops=edge_flops)
    # TODO(synk): fully in-kernel fused segment reduction (scalar-prefetched
    # per-target offsets, MoE grouped-matmul pattern) not implemented.
    return jax.ops.segment_sum(msg, tgt_p, num_segments=n_right_pad,
                               indices_are_sorted=sort_edges)

  # ---- conv_v_to_c: left = variables, right = constraints --------------------
  ck = kp['conv_v_to_c']
  tgt_p, src_p, ef_p = prep_edges(e_cons, e_var, nc_pad)
  agg_c = conv_aggregate(ck, var_h, cons_h, tgt_p, src_p, ef_p, nc_pad)
  cons_h = _row_call(_conv_out_kernel, [agg_c, cons_h],
                     [ck['wo1a'], ck['wo1b'], ck['bo1'], ck['wo2'], ck['bo2']],
                     EMB, dt, nc_blk, flops=2 * nc_pad * 3 * EMB * EMB)

  # ---- conv_c_to_v + fused policy head (lane-dense [N,128] output) -----------
  ck = kp['conv_c_to_v']
  tgt_p, src_p, ef_p = prep_edges(e_var, e_cons, nv_pad)
  agg_v = conv_aggregate(ck, cons_h, var_h, tgt_p, src_p, ef_p, nv_pad)
  out = _row_call(_conv_out_head_kernel, [agg_v, var_h],
                  [ck['wo1a'], ck['wo1b'], ck['bo1'], ck['wo2'], ck['bo2'],
                   kp['head']['w1'], kp['head']['b1'], kp['head']['w2']],
                  LANE, jnp.float32, nv_blk,
                  flops=2 * nv_pad * (4 * EMB * EMB + EMB * LANE))
  return out[:n_vars, 0]


# --------------------------------------------------------------------------
# Pure-JAX f32 reference (same math as the PyTorch module)
# --------------------------------------------------------------------------
def ref_forward(p, cons_x, edge_indices, edge_x, var_x):
  relu = lambda v: jnp.maximum(v, 0.0)
  prenorm = lambda x, s, sc: (x - s) * sc

  cons_h = relu(relu(prenorm(cons_x, p['cons_shift'], p['cons_scale'])
                     @ p['cons_w1'] + p['cons_b1'])
                @ p['cons_w2'] + p['cons_b2'])
  var_h = relu(relu(prenorm(var_x, p['var_shift'], p['var_scale'])
                    @ p['var_w1'] + p['var_b1'])
               @ p['var_w2'] + p['var_b2'])
  edge_h = (prenorm(edge_x, p['edge_shift'], p['edge_scale'])
            @ p['edge_w'] + p['edge_b'])

  def conv(cp, left, src, tgt, right):
    nf_j = left[src]
    nf_i = right[tgt]
    joint = nf_i @ cp['wl'] + cp['bl'] + edge_h @ cp['we'] + nf_j @ cp['wr']
    joint = relu(joint * cp['fscale'])
    msg = joint @ cp['wf'] + cp['bf']
    agg = jax.ops.segment_sum(msg, tgt, num_segments=right.shape[0])
    h = relu(jnp.concatenate([agg * cp['pscale'], right], axis=1)
             @ cp['wo1'] + cp['bo1'])
    return h @ cp['wo2'] + cp['bo2']

  cons_h = conv(p['conv_v_to_c'], var_h, edge_indices[1], edge_indices[0],
                cons_h)
  var_h = conv(p['conv_c_to_v'], cons_h, edge_indices[0], edge_indices[1],
               var_h)
  out = relu(var_h @ p['out_w1'] + p['out_b1']) @ p['out_w2']
  return out[:, 0]


# --------------------------------------------------------------------------
if __name__ == "__main__":
  key = jax.random.PRNGKey(0)
  kp_, kd = jax.random.split(key)
  params = init_params(kp_)
  kernel_params = prepare_params(params)   # folded / packed ONCE, outside jit

  n_cons, n_vars, n_edges = 16, 24, 40
  k1, k2, k3, k4, k5 = jax.random.split(kd, 5)
  constraint_features = jax.random.normal(k1, (n_cons, CONS_NFEATS), jnp.float32)
  variable_features = jax.random.normal(k2, (n_vars, VAR_NFEATS), jnp.float32)
  edge_features = jax.random.normal(k3, (n_edges, EDGE_NFEATS), jnp.float32)
  e_cons = jax.random.randint(k4, (n_edges,), 0, n_cons, jnp.int32)
  e_var = jax.random.randint(k5, (n_edges,), 0, n_vars, jnp.int32)
  edge_indices = jnp.stack([e_cons, e_var], axis=0)  # [2, E]

  # Small blocks here so the row-tiled grids take multiple pipelined steps even
  # at toy sizes; production defaults are 2048-row blocks.
  fwd = jax.jit(functools.partial(gnn_policy_forward, kernel_params,
                                  node_block=16, edge_block=16))
  out = jax.block_until_ready(fwd(constraint_features, edge_indices,
                                  edge_features, variable_features))
  assert out.shape == (n_vars,)

  ref = jax.block_until_ready(
      ref_forward(params, constraint_features, edge_indices, edge_features,
                  variable_features))

  # bf16 matmul operands over ~12 stacked matmuls -> compare with a normalized
  # max-error metric against the f32 reference.
  err = float(jnp.max(jnp.abs(out - ref)))
  scale = float(jnp.max(jnp.abs(ref))) + 1e-6
  if not (err / scale < 5e-2):
    raise AssertionError(
        f"Pallas output mismatch: max abs err={err}, ref scale={scale}, "
        f"rel={err / scale}")
  print("KERNEL_OK")
</pallas_src>

<mosaic_0001>
module attributes {stable_mosaic.version = 11 : i64} {
  func.func @_embed_kernel(%arg0: i32, %arg1: memref<16x128xf32, #tpu.memory_space<vmem>>, %arg2: memref<128x64xf32, #tpu.memory_space<vmem>>, %arg3: memref<1x64xf32, #tpu.memory_space<vmem>>, %arg4: memref<64x64xbf16, #tpu.memory_space<vmem>>, %arg5: memref<1x64xf32, #tpu.memory_space<vmem>>, %arg6: memref<16x64xbf16, #tpu.memory_space<vmem>>) attributes {dimension_semantics = [#tpu.dimension_semantics<parallel>], iteration_bounds = array<i64: 1>, scalar_prefetch = 0 : i64, scratch_operands = 0 : i64, tpu.core_type = #tpu.core_type<tc>, window_params = [{transform_indices = @transform_0, window_bounds = array<i64: 16, 128>}, {pipeline_mode = #tpu.pipeline_mode<synchronous>, transform_indices = @transform_1, window_bounds = array<i64: 128, 64>}, {pipeline_mode = #tpu.pipeline_mode<synchronous>, transform_indices = @transform_2, window_bounds = array<i64: 1, 64>}, {pipeline_mode = #tpu.pipeline_mode<synchronous>, transform_indices = @transform_3, window_bounds = array<i64: 64, 64>}, {pipeline_mode = #tpu.pipeline_mode<synchronous>, transform_indices = @transform_4, window_bounds = array<i64: 1, 64>}, {transform_indices = @transform_5, window_bounds = array<i64: 16, 64>}]} {
    %c0 = arith.constant 0 : index
    %c0_0 = arith.constant 0 : index
    %0 = vector.load %arg1[%c0, %c0_0] : memref<16x128xf32, #tpu.memory_space<vmem>>, vector<16x128xf32>
    %c0_1 = arith.constant 0 : index
    %c0_2 = arith.constant 0 : index
    %1 = vector.load %arg2[%c0_1, %c0_2] : memref<128x64xf32, #tpu.memory_space<vmem>>, vector<128x64xf32>
    %cst = arith.constant dense<0.000000e+00> : vector<16x64xf32>
    %2 = tpu.matmul %0, %1, %cst {dimension_numbers = #tpu.dot_dimension_numbers<[1], [0], [0], [1], [0, 0, 1, 1], [], []>} : vector<16x128xf32>, vector<128x64xf32>, vector<16x64xf32> -> vector<16x64xf32>
    %c0_3 = arith.constant 0 : index
    %c0_4 = arith.constant 0 : index
    %3 = vector.load %arg3[%c0_3, %c0_4] : memref<1x64xf32, #tpu.memory_space<vmem>>, vector<1x64xf32>
    %4 = vector.broadcast %3 : vector<1x64xf32> to vector<16x64xf32>
    %5 = arith.addf %2, %4 : vector<16x64xf32>
    %cst_5 = arith.constant 0.000000e+00 : f32
    %6 = vector.broadcast %cst_5 : f32 to vector<16x64xf32>
    %7 = arith.maximumf %5, %6 : vector<16x64xf32>
    %8 = arith.truncf %7 : vector<16x64xf32> to vector<16x64xbf16>
    %c0_6 = arith.constant 0 : index
    %c0_7 = arith.constant 0 : index
    %9 = vector.load %arg4[%c0_6, %c0_7] : memref<64x64xbf16, #tpu.memory_space<vmem>>, vector<64x64xbf16>
    %cst_8 = arith.constant dense<0.000000e+00> : vector<16x64xf32>
    %10 = tpu.matmul %8, %9, %cst_8 {dimension_numbers = #tpu.dot_dimension_numbers<[1], [0], [0], [1], [0, 0, 1, 1], [], []>} : vector<16x64xbf16>, vector<64x64xbf16>, vector<16x64xf32> -> vector<16x64xf32>
    %c0_9 = arith.constant 0 : index
    %c0_10 = arith.constant 0 : index
    %11 = vector.load %arg5[%c0_9, %c0_10] : memref<1x64xf32, #tpu.memory_space<vmem>>, vector<1x64xf32>
    %12 = vector.broadcast %11 : vector<1x64xf32> to vector<16x64xf32>
    %13 = arith.addf %10, %12 : vector<16x64xf32>
    %cst_11 = arith.constant 0.000000e+00 : f32
    %14 = vector.broadcast %cst_11 : f32 to vector<16x64xf32>
    %15 = arith.maximumf %13, %14 : vector<16x64xf32>
    %16 = arith.truncf %15 : vector<16x64xf32> to vector<16x64xbf16>
    %c0_12 = arith.constant 0 : index
    %c0_13 = arith.constant 0 : index
    %17 = vector.load %arg6[%c0_12, %c0_13] : memref<16x64xbf16, #tpu.memory_space<vmem>>, vector<16x64xbf16>
    tpu.vector_store %arg6[%c0_12, %c0_13], %16 {strides = array<i32>} : memref<16x64xbf16, #tpu.memory_space<vmem>>, vector<16x64xbf16>,
    return
  }
  func.func @transform_0(%arg0: i32) -> (i32, i32) {
    %c0_i32 = arith.constant 0 : i32
    %c0_i32_0 = arith.constant 0 : i32
    return %arg0, %c0_i32 : i32, i32
  }
  func.func @transform_1(%arg0: i32) -> (i32, i32) {
    %c0_i32 = arith.constant 0 : i32
    %c0_i32_0 = arith.constant 0 : i32
    %c0_i32_1 = arith.constant 0 : i32
    return %c0_i32, %c0_i32_0 : i32, i32
  }
  func.func @transform_2(%arg0: i32) -> (i32, i32) {
    %c0_i32 = arith.constant 0 : i32
    %c0_i32_0 = arith.constant 0 : i32
    %c0_i32_1 = arith.constant 0 : i32
    return %c0_i32, %c0_i32_0 : i32, i32
  }
  func.func @transform_3(%arg0: i32) -> (i32, i32) {
    %c0_i32 = arith.constant 0 : i32
    %c0_i32_0 = arith.constant 0 : i32
    %c0_i32_1 = arith.constant 0 : i32
    return %c0_i32, %c0_i32_0 : i32, i32
  }
  func.func @transform_4(%arg0: i32) -> (i32, i32) {
    %c0_i32 = arith.constant 0 : i32
    %c0_i32_0 = arith.constant 0 : i32
    %c0_i32_1 = arith.constant 0 : i32
    return %c0_i32, %c0_i32_0 : i32, i32
  }
  func.func @transform_5(%arg0: i32) -> (i32, i32) {
    %c0_i32 = arith.constant 0 : i32
    %c0_i32_0 = arith.constant 0 : i32
    return %arg0, %c0_i32 : i32, i32
  }
}

module attributes {stable_mosaic.version = 11 : i64} {
  func.func @_embed_kernel(%arg0: i32, %arg1: memref<16x128xf32, #tpu.memory_space<vmem>>, %arg2: memref<128x64xf32, #tpu.memory_space<vmem>>, %arg3: memref<1x64xf32, #tpu.memory_space<vmem>>, %arg4: memref<64x64xbf16, #tpu.memory_space<vmem>>, %arg5: memref<1x64xf32, #tpu.memory_space<vmem>>, %arg6: memref<16x64xbf16, #tpu.memory_space<vmem>>) attributes {dimension_semantics = [#tpu.dimension_semantics<parallel>], iteration_bounds = array<i64: 2>, scalar_prefetch = 0 : i64, scratch_operands = 0 : i64, tpu.core_type = #tpu.core_type<tc>, window_params = [{transform_indices = @transform_0, window_bounds = array<i64: 16, 128>}, {pipeline_mode = #tpu.pipeline_mode<synchronous>, transform_indices = @transform_1, window_bounds = array<i64: 128, 64>}, {pipeline_mode = #tpu.pipeline_mode<synchronous>, transform_indices = @transform_2, window_bounds = array<i64: 1, 64>}, {pipeline_mode = #tpu.pipeline_mode<synchronous>, transform_indices = @transform_3, window_bounds = array<i64: 64, 64>}, {pipeline_mode = #tpu.pipeline_mode<synchronous>, transform_indices = @transform_4, window_bounds = array<i64: 1, 64>}, {transform_indices = @transform_5, window_bounds = array<i64: 16, 64>}]} {
    %c0 = arith.constant 0 : index
    %c0_0 = arith.constant 0 : index
    %0 = vector.load %arg1[%c0, %c0_0] : memref<16x128xf32, #tpu.memory_space<vmem>>, vector<16x128xf32>
    %c0_1 = arith.constant 0 : index
    %c0_2 = arith.constant 0 : index
    %1 = vector.load %arg2[%c0_1, %c0_2] : memref<128x64xf32, #tpu.memory_space<vmem>>, vector<128x64xf32>
    %cst = arith.constant dense<0.000000e+00> : vector<16x64xf32>
    %2 = tpu.matmul %0, %1, %cst {dimension_numbers = #tpu.dot_dimension_numbers<[1], [0], [0], [1], [0, 0, 1, 1], [], []>} : vector<16x128xf32>, vector<128x64xf32>, vector<16x64xf32> -> vector<16x64xf32>
    %c0_3 = arith.constant 0 : index
    %c0_4 = arith.constant 0 : index
    %3 = vector.load %arg3[%c0_3, %c0_4] : memref<1x64xf32, #tpu.memory_space<vmem>>, vector<1x64xf32>
    %4 = vector.broadcast %3 : vector<1x64xf32> to vector<16x64xf32>
    %5 = arith.addf %2, %4 : vector<16x64xf32>
    %cst_5 = arith.constant 0.000000e+00 : f32
    %6 = vector.broadcast %cst_5 : f32 to vector<16x64xf32>
    %7 = arith.maximumf %5, %6 : vector<16x64xf32>
    %8 = arith.truncf %7 : vector<16x64xf32> to vector<16x64xbf16>
    %c0_6 = arith.constant 0 : index
    %c0_7 = arith.constant 0 : index
    %9 = vector.load %arg4[%c0_6, %c0_7] : memref<64x64xbf16, #tpu.memory_space<vmem>>, vector<64x64xbf16>
    %cst_8 = arith.constant dense<0.000000e+00> : vector<16x64xf32>
    %10 = tpu.matmul %8, %9, %cst_8 {dimension_numbers = #tpu.dot_dimension_numbers<[1], [0], [0], [1], [0, 0, 1, 1], [], []>} : vector<16x64xbf16>, vector<64x64xbf16>, vector<16x64xf32> -> vector<16x64xf32>
    %c0_9 = arith.constant 0 : index
    %c0_10 = arith.constant 0 : index
    %11 = vector.load %arg5[%c0_9, %c0_10] : memref<1x64xf32, #tpu.memory_space<vmem>>, vector<1x64xf32>
    %12 = vector.broadcast %11 : vector<1x64xf32> to vector<16x64xf32>
    %13 = arith.addf %10, %12 : vector<16x64xf32>
    %cst_11 = arith.constant 0.000000e+00 : f32
    %14 = vector.broadcast %cst_11 : f32 to vector<16x64xf32>
    %15 = arith.maximumf %13, %14 : vector<16x64xf32>
    %16 = arith.truncf %15 : vector<16x64xf32> to vector<16x64xbf16>
    %c0_12 = arith.constant 0 : index
    %c0_13 = arith.constant 0 : index
    %17 = vector.load %arg6[%c0_12, %c0_13] : memref<16x64xbf16, #tpu.memory_space<vmem>>, vector<16x64xbf16>
    tpu.vector_store %arg6[%c0_12, %c0_13], %16 {strides = array<i32>} : memref<16x64xbf16, #tpu.memory_space<vmem>>, vector<16x64xbf16>,
    return
  }
  func.func @transform_0(%arg0: i32) -> (i32, i32) {
    %c0_i32 = arith.constant 0 : i32
    %c0_i32_0 = arith.constant 0 : i32
    return %arg0, %c0_i32 : i32, i32
  }
  func.func @transform_1(%arg0: i32) -> (i32, i32) {
    %c0_i32 = arith.constant 0 : i32
    %c0_i32_0 = arith.constant 0 : i32
    %c0_i32_1 = arith.constant 0 : i32
    return %c0_i32, %c0_i32_0 : i32, i32
  }
  func.func @transform_2(%arg0: i32) -> (i32, i32) {
    %c0_i32 = arith.constant 0 : i32
    %c0_i32_0 = arith.constant 0 : i32
    %c0_i32_1 = arith.constant 0 : i32
    return %c0_i32, %c0_i32_0 : i32, i32
  }
  func.func @transform_3(%arg0: i32) -> (i32, i32) {
    %c0_i32 = arith.constant 0 : i32
    %c0_i32_0 = arith.constant 0 : i32
    %c0_i32_1 = arith.constant 0 : i32
    return %c0_i32, %c0_i32_0 : i32, i32
  }
  func.func @transform_4(%arg0: i32) -> (i32, i32) {
    %c0_i32 = arith.constant 0 : i32
    %c0_i32_0 = arith.constant 0 : i32
    %c0_i32_1 = arith.constant 0 : i32
    return %c0_i32, %c0_i32_0 : i32, i32
  }
  func.func @transform_5(%arg0: i32) -> (i32, i32) {
    %c0_i32 = arith.constant 0 : i32
    %c0_i32_0 = arith.constant 0 : i32
    return %arg0, %c0_i32 : i32, i32
  }
}

module attributes {stable_mosaic.version = 11 : i64} {
  func.func @_edge_msg_kernel(%arg0: i32, %arg1: memref<16x64xbf16, #tpu.memory_space<vmem>>, %arg2: memref<16x64xbf16, #tpu.memory_space<vmem>>, %arg3: memref<16x2xf32, #tpu.memory_space<vmem>>, %arg4: memref<64x64xbf16, #tpu.memory_space<vmem>>, %arg5: memref<64x64xbf16, #tpu.memory_space<vmem>>, %arg6: memref<2x64xf32, #tpu.memory_space<vmem>>, %arg7: memref<1x64xf32, #tpu.memory_space<vmem>>, %arg8: memref<64x64xbf16, #tpu.memory_space<vmem>>, %arg9: memref<1x64xf32, #tpu.memory_space<vmem>>, %arg10: memref<16x64xf32, #tpu.memory_space<vmem>>) attributes {dimension_semantics = [#tpu.dimension_semantics<parallel>], iteration_bounds = array<i64: 3>, scalar_prefetch = 0 : i64, scratch_operands = 0 : i64, tpu.core_type = #tpu.core_type<tc>, window_params = [{transform_indices = @transform_0, window_bounds = array<i64: 16, 64>}, {transform_indices = @transform_1, window_bounds = array<i64: 16, 64>}, {transform_indices = @transform_2, window_bounds = array<i64: 16, 2>}, {pipeline_mode = #tpu.pipeline_mode<synchronous>, transform_indices = @transform_3, window_bounds = array<i64: 64, 64>}, {pipeline_mode = #tpu.pipeline_mode<synchronous>, transform_indices = @transform_4, window_bounds = array<i64: 64, 64>}, {pipeline_mode = #tpu.pipeline_mode<synchronous>, transform_indices = @transform_5, window_bounds = array<i64: 2, 64>}, {pipeline_mode = #tpu.pipeline_mode<synchronous>, transform_indices = @transform_6, window_bounds = array<i64: 1, 64>}, {pipeline_mode = #tpu.pipeline_mode<synchronous>, transform_indices = @transform_7, window_bounds = array<i64: 64, 64>}, {pipeline_mode = #tpu.pipeline_mode<synchronous>, transform_indices = @transform_8, window_bounds = array<i64: 1, 64>}, {transform_indices = @transform_9, window_bounds = array<i64: 16, 64>}]} {
    %c0 = arith.constant 0 : index
    %c0_0 = arith.constant 0 : index
    %0 = vector.load %arg1[%c0, %c0_0] : memref<16x64xbf16, #tpu.memory_space<vmem>>, vector<16x64xbf16>
    %c0_1 = arith.constant 0 : index
    %c0_2 = arith.constant 0 : index
    %1 = vector.load %arg4[%c0_1, %c0_2] : memref<64x64xbf16, #tpu.memory_space<vmem>>, vector<64x64xbf16>
    %cst = arith.constant dense<0.000000e+00> : vector<16x64xf32>
    %2 = tpu.matmul %0, %1, %cst {dimension_numbers = #tpu.dot_dimension_numbers<[1], [0], [0], [1], [0, 0, 1, 1], [], []>} : vector<16x64xbf16>, vector<64x64xbf16>, vector<16x64xf32> -> vector<16x64xf32>
    %c0_3 = arith.constant 0 : index
    %c0_4 = arith.constant 0 : index
    %3 = vector.load %arg2[%c0_3, %c0_4] : memref<16x64xbf16, #tpu.memory_space<vmem>>, vector<16x64xbf16>
    %c0_5 = arith.constant 0 : index
    %c0_6 = arith.constant 0 : index
    %4 = vector.load %arg5[%c0_5, %c0_6] : memref<64x64xbf16, #tpu.memory_space<vmem>>, vector<64x64xbf16>
    %cst_7 = arith.constant dense<0.000000e+00> : vector<16x64xf32>
    %5 = tpu.matmul %3, %4, %cst_7 {dimension_numbers = #tpu.dot_dimension_numbers<[1], [0], [0], [1], [0, 0, 1, 1], [], []>} : vector<16x64xbf16>, vector<64x64xbf16>, vector<16x64xf32> -> vector<16x64xf32>
    %6 = arith.addf %2, %5 : vector<16x64xf32>
    %c0_8 = arith.constant 0 : index
    %c0_9 = arith.constant 0 : index
    %7 = vector.load %arg3[%c0_8, %c0_9] : memref<16x2xf32, #tpu.memory_space<vmem>>, vector<16x2xf32>
    %c0_10 = arith.constant 0 : index
    %c0_11 = arith.constant 0 : index
    %8 = vector.load %arg6[%c0_10, %c0_11] : memref<2x64xf32, #tpu.memory_space<vmem>>, vector<2x64xf32>
    %9 = vector.extract_strided_slice %7 {offsets = [0, 0], sizes = [16, 1], strides = [1, 1]} : vector<16x2xf32> to vector<16x1xf32>
    %10 = vector.extract_strided_slice %8 {offsets = [0, 0], sizes = [1, 64], strides = [1, 1]} : vector<2x64xf32> to vector<1x64xf32>
    %11 = vector.broadcast %9 : vector<16x1xf32> to vector<16x64xf32>
    %12 = vector.broadcast %10 : vector<1x64xf32> to vector<16x64xf32>
    %13 = arith.mulf %11, %12 : vector<16x64xf32>
    %14 = arith.addf %6, %13 : vector<16x64xf32>
    %15 = vector.extract_strided_slice %7 {offsets = [0, 1], sizes = [16, 1], strides = [1, 1]} : vector<16x2xf32> to vector<16x1xf32>
    %16 = vector.extract_strided_slice %8 {offsets = [1, 0], sizes = [1, 64], strides = [1, 1]} : vector<2x64xf32> to vector<1x64xf32>
    %17 = vector.broadcast %15 : vector<16x1xf32> to vector<16x64xf32>
    %18 = vector.broadcast %16 : vector<1x64xf32> to vector<16x64xf32>
    %19 = arith.mulf %17, %18 : vector<16x64xf32>
    %20 = arith.addf %14, %19 : vector<16x64xf32>
    %c0_12 = arith.constant 0 : index
    %c0_13 = arith.constant 0 : index
    %21 = vector.load %arg7[%c0_12, %c0_13] : memref<1x64xf32, #tpu.memory_space<vmem>>, vector<1x64xf32>
    %22 = vector.broadcast %21 : vector<1x64xf32> to vector<16x64xf32>
    %23 = arith.addf %20, %22 : vector<16x64xf32>
    %cst_14 = arith.constant 0.000000e+00 : f32
    %24 = vector.broadcast %cst_14 : f32 to vector<16x64xf32>
    %25 = arith.maximumf %23, %24 : vector<16x64xf32>
    %26 = arith.truncf %25 : vector<16x64xf32> to vector<16x64xbf16>
    %c0_15 = arith.constant 0 : index
    %c0_16 = arith.constant 0 : index
    %27 = vector.load %arg8[%c0_15, %c0_16] : memref<64x64xbf16, #tpu.memory_space<vmem>>, vector<64x64xbf16>
    %cst_17 = arith.constant dense<0.000000e+00> : vector<16x64xf32>
    %28 = tpu.matmul %26, %27, %cst_17 {dimension_numbers = #tpu.dot_dimension_numbers<[1], [0], [0], [1], [0, 0, 1, 1], [], []>} : vector<16x64xbf16>, vector<64x64xbf16>, vector<16x64xf32> -> vector<16x64xf32>
    %c0_18 = arith.constant 0 : index
    %c0_19 = arith.constant 0 : index
    %29 = vector.load %arg9[%c0_18, %c0_19] : memref<1x64xf32, #tpu.memory_space<vmem>>, vector<1x64xf32>
    %30 = vector.broadcast %29 : vector<1x64xf32> to vector<16x64xf32>
    %31 = arith.addf %28, %30 : vector<16x64xf32>
    %c16_i32 = arith.constant 16 : i32
    %32 = arith.muli %arg0, %c16_i32 : i32
    %33 = tpu.iota {dimensions = array<i32: 0>} : vector<16x64xi32>
    %34 = vector.broadcast %32 : i32 to vector<16x64xi32>
    %35 = arith.addi %33, %34 : vector<16x64xi32>
    %c40_i32 = arith.constant 40 : i32
    %36 = vector.broadcast %c40_i32 : i32 to vector<16x64xi32>
    %37 = arith.cmpi slt, %35, %36 : vector<16x64xi32>
    %cst_20 = arith.constant 0.000000e+00 : f32
    %38 = vector.broadcast %cst_20 : f32 to vector<16x64xf32>
    %39 = arith.select %37, %31, %38 : vector<16x64xi1>, vector<16x64xf32>
    %c0_21 = arith.constant 0 : index
    %c0_22 = arith.constant 0 : index
    %40 = vector.load %arg10[%c0_21, %c0_22] : memref<16x64xf32, #tpu.memory_space<vmem>>, vector<16x64xf32>
    tpu.vector_store %arg10[%c0_21, %c0_22], %39 {strides = array<i32>} : memref<16x64xf32, #tpu.memory_space<vmem>>, vector<16x64xf32>,
    return
  }
  func.func @transform_0(%arg0: i32) -> (i32, i32) {
    %c0_i32 = arith.constant 0 : i32
    %c0_i32_0 = arith.constant 0 : i32
    return %arg0, %c0_i32 : i32, i32
  }
  func.func @transform_1(%arg0: i32) -> (i32, i32) {
    %c0_i32 = arith.constant 0 : i32
    %c0_i32_0 = arith.constant 0 : i32
    return %arg0, %c0_i32 : i32, i32
  }
  func.func @transform_2(%arg0: i32) -> (i32, i32) {
    %c0_i32 = arith.constant 0 : i32
    %c0_i32_0 = arith.constant 0 : i32
    return %arg0, %c0_i32 : i32, i32
  }
  func.func @transform_3(%arg0: i32) -> (i32, i32) {
    %c0_i32 = arith.constant 0 : i32
    %c0_i32_0 = arith.constant 0 : i32
    %c0_i32_1 = arith.constant 0 : i32
    return %c0_i32, %c0_i32_0 : i32, i32
  }
  func.func @transform_4(%arg0: i32) -> (i32, i32) {
    %c0_i32 = arith.constant 0 : i32
    %c0_i32_0 = arith.constant 0 : i32
    %c0_i32_1 = arith.constant 0 : i32
    return %c0_i32, %c0_i32_0 : i32, i32
  }
  func.func @transform_5(%arg0: i32) -> (i32, i32) {
    %c0_i32 = arith.constant 0 : i32
    %c0_i32_0 = arith.constant 0 : i32
    %c0_i32_1 = arith.constant 0 : i32
    return %c0_i32, %c0_i32_0 : i32, i32
  }
  func.func @transform_6(%arg0: i32) -> (i32, i32) {
    %c0_i32 = arith.constant 0 : i32
    %c0_i32_0 = arith.constant 0 : i32
    %c0_i32_1 = arith.constant 0 : i32
    return %c0_i32, %c0_i32_0 : i32, i32
  }
  func.func @transform_7(%arg0: i32) -> (i32, i32) {
    %c0_i32 = arith.constant 0 : i32
    %c0_i32_0 = arith.constant 0 : i32
    %c0_i32_1 = arith.constant 0 : i32
    return %c0_i32, %c0_i32_0 : i32, i32
  }
  func.func @transform_8(%arg0: i32) -> (i32, i32) {
    %c0_i32 = arith.constant 0 : i32
    %c0_i32_0 = arith.constant 0 : i32
    %c0_i32_1 = arith.constant 0 : i32
    return %c0_i32, %c0_i32_0 : i32, i32
  }
  func.func @transform_9(%arg0: i32) -> (i32, i32) {
    %c0_i32 = arith.constant 0 : i32
    %c0_i32_0 = arith.constant 0 : i32
    return %arg0, %c0_i32 : i32, i32
  }
}

module attributes {stable_mosaic.version = 11 : i64} {
  func.func @_conv_out_kernel(%arg0: i32, %arg1: memref<16x64xf32, #tpu.memory_space<vmem>>, %arg2: memref<16x64xbf16, #tpu.memory_space<vmem>>, %arg3: memref<64x64xbf16, #tpu.memory_space<vmem>>, %arg4: memref<64x64xbf16, #tpu.memory_space<vmem>>, %arg5: memref<1x64xf32, #tpu.memory_space<vmem>>, %arg6: memref<64x64xbf16, #tpu.memory_space<vmem>>, %arg7: memref<1x64xf32, #tpu.memory_space<vmem>>, %arg8: memref<16x64xbf16, #tpu.memory_space<vmem>>) attributes {dimension_semantics = [#tpu.dimension_semantics<parallel>], iteration_bounds = array<i64: 1>, scalar_prefetch = 0 : i64, scratch_operands = 0 : i64, tpu.core_type = #tpu.core_type<tc>, window_params = [{transform_indices = @transform_0, window_bounds = array<i64: 16, 64>}, {transform_indices = @transform_1, window_bounds = array<i64: 16, 64>}, {pipeline_mode = #tpu.pipeline_mode<synchronous>, transform_indices = @transform_2, window_bounds = array<i64: 64, 64>}, {pipeline_mode = #tpu.pipeline_mode<synchronous>, transform_indices = @transform_3, window_bounds = array<i64: 64, 64>}, {pipeline_mode = #tpu.pipeline_mode<synchronous>, transform_indices = @transform_4, window_bounds = array<i64: 1, 64>}, {pipeline_mode = #tpu.pipeline_mode<synchronous>, transform_indices = @transform_5, window_bounds = array<i64: 64, 64>}, {pipeline_mode = #tpu.pipeline_mode<synchronous>, transform_indices = @transform_6, window_bounds = array<i64: 1, 64>}, {transform_indices = @transform_7, window_bounds = array<i64: 16, 64>}]} {
    %c0 = arith.constant 0 : index
    %c0_0 = arith.constant 0 : index
    %0 = vector.load %arg1[%c0, %c0_0] : memref<16x64xf32, #tpu.memory_space<vmem>>, vector<16x64xf32>
    %1 = arith.truncf %0 : vector<16x64xf32> to vector<16x64xbf16>
    %c0_1 = arith.constant 0 : index
    %c0_2 = arith.constant 0 : index
    %2 = vector.load %arg3[%c0_1, %c0_2] : memref<64x64xbf16, #tpu.memory_space<vmem>>, vector<64x64xbf16>
    %cst = arith.constant dense<0.000000e+00> : vector<16x64xf32>
    %3 = tpu.matmul %1, %2, %cst {dimension_numbers = #tpu.dot_dimension_numbers<[1], [0], [0], [1], [0, 0, 1, 1], [], []>} : vector<16x64xbf16>, vector<64x64xbf16>, vector<16x64xf32> -> vector<16x64xf32>
    %c0_3 = arith.constant 0 : index
    %c0_4 = arith.constant 0 : index
    %4 = vector.load %arg2[%c0_3, %c0_4] : memref<16x64xbf16, #tpu.memory_space<vmem>>, vector<16x64xbf16>
    %c0_5 = arith.constant 0 : index
    %c0_6 = arith.constant 0 : index
    %5 = vector.load %arg4[%c0_5, %c0_6] : memref<64x64xbf16, #tpu.memory_space<vmem>>, vector<64x64xbf16>
    %cst_7 = arith.constant dense<0.000000e+00> : vector<16x64xf32>
    %6 = tpu.matmul %4, %5, %cst_7 {dimension_numbers = #tpu.dot_dimension_numbers<[1], [0], [0], [1], [0, 0, 1, 1], [], []>} : vector<16x64xbf16>, vector<64x64xbf16>, vector<16x64xf32> -> vector<16x64xf32>
    %7 = arith.addf %3, %6 : vector<16x64xf32>
    %c0_8 = arith.constant 0 : index
    %c0_9 = arith.constant 0 : index
    %8 = vector.load %arg5[%c0_8, %c0_9] : memref<1x64xf32, #tpu.memory_space<vmem>>, vector<1x64xf32>
    %9 = vector.broadcast %8 : vector<1x64xf32> to vector<16x64xf32>
    %10 = arith.addf %7, %9 : vector<16x64xf32>
    %cst_10 = arith.constant 0.000000e+00 : f32
    %11 = vector.broadcast %cst_10 : f32 to vector<16x64xf32>
    %12 = arith.maximumf %10, %11 : vector<16x64xf32>
    %13 = arith.truncf %12 : vector<16x64xf32> to vector<16x64xbf16>
    %c0_11 = arith.constant 0 : index
    %c0_12 = arith.constant 0 : index
    %14 = vector.load %arg6[%c0_11, %c0_12] : memref<64x64xbf16, #tpu.memory_space<vmem>>, vector<64x64xbf16>
    %cst_13 = arith.constant dense<0.000000e+00> : vector<16x64xf32>
    %15 = tpu.matmul %13, %14, %cst_13 {dimension_numbers = #tpu.dot_dimension_numbers<[1], [0], [0], [1], [0, 0, 1, 1], [], []>} : vector<16x64xbf16>, vector<64x64xbf16>, vector<16x64xf32> -> vector<16x64xf32>
    %c0_14 = arith.constant 0 : index
    %c0_15 = arith.constant 0 : index
    %16 = vector.load %arg7[%c0_14, %c0_15] : memref<1x64xf32, #tpu.memory_space<vmem>>, vector<1x64xf32>
    %17 = vector.broadcast %16 : vector<1x64xf32> to vector<16x64xf32>
    %18 = arith.addf %15, %17 : vector<16x64xf32>
    %19 = arith.truncf %18 : vector<16x64xf32> to vector<16x64xbf16>
    %c0_16 = arith.constant 0 : index
    %c0_17 = arith.constant 0 : index
    %20 = vector.load %arg8[%c0_16, %c0_17] : memref<16x64xbf16, #tpu.memory_space<vmem>>, vector<16x64xbf16>
    tpu.vector_store %arg8[%c0_16, %c0_17], %19 {strides = array<i32>} : memref<16x64xbf16, #tpu.memory_space<vmem>>, vector<16x64xbf16>,
    return
  }
  func.func @transform_0(%arg0: i32) -> (i32, i32) {
    %c0_i32 = arith.constant 0 : i32
    %c0_i32_0 = arith.constant 0 : i32
    return %arg0, %c0_i32 : i32, i32
  }
  func.func @transform_1(%arg0: i32) -> (i32, i32) {
    %c0_i32 = arith.constant 0 : i32
    %c0_i32_0 = arith.constant 0 : i32
    return %arg0, %c0_i32 : i32, i32
  }
  func.func @transform_2(%arg0: i32) -> (i32, i32) {
    %c0_i32 = arith.constant 0 : i32
    %c0_i32_0 = arith.constant 0 : i32
    %c0_i32_1 = arith.constant 0 : i32
    return %c0_i32, %c0_i32_0 : i32, i32
  }
  func.func @transform_3(%arg0: i32) -> (i32, i32) {
    %c0_i32 = arith.constant 0 : i32
    %c0_i32_0 = arith.constant 0 : i32
    %c0_i32_1 = arith.constant 0 : i32
    return %c0_i32, %c0_i32_0 : i32, i32
  }
  func.func @transform_4(%arg0: i32) -> (i32, i32) {
    %c0_i32 = arith.constant 0 : i32
    %c0_i32_0 = arith.constant 0 : i32
    %c0_i32_1 = arith.constant 0 : i32
    return %c0_i32, %c0_i32_0 : i32, i32
  }
  func.func @transform_5(%arg0: i32) -> (i32, i32) {
    %c0_i32 = arith.constant 0 : i32
    %c0_i32_0 = arith.constant 0 : i32
    %c0_i32_1 = arith.constant 0 : i32
    return %c0_i32, %c0_i32_0 : i32, i32
  }
  func.func @transform_6(%arg0: i32) -> (i32, i32) {
    %c0_i32 = arith.constant 0 : i32
    %c0_i32_0 = arith.constant 0 : i32
    %c0_i32_1 = arith.constant 0 : i32
    return %c0_i32, %c0_i32_0 : i32, i32
  }
  func.func @transform_7(%arg0: i32) -> (i32, i32) {
    %c0_i32 = arith.constant 0 : i32
    %c0_i32_0 = arith.constant 0 : i32
    return %arg0, %c0_i32 : i32, i32
  }
}

module attributes {stable_mosaic.version = 11 : i64} {
  func.func @_conv_out_head_kernel(%arg0: i32, %arg1: memref<16x64xf32, #tpu.memory_space<vmem>>, %arg2: memref<16x64xbf16, #tpu.memory_space<vmem>>, %arg3: memref<64x64xbf16, #tpu.memory_space<vmem>>, %arg4: memref<64x64xbf16, #tpu.memory_space<vmem>>, %arg5: memref<1x64xf32, #tpu.memory_space<vmem>>, %arg6: memref<64x64xbf16, #tpu.memory_space<vmem>>, %arg7: memref<1x64xf32, #tpu.memory_space<vmem>>, %arg8: memref<64x64xbf16, #tpu.memory_space<vmem>>, %arg9: memref<1x64xf32, #tpu.memory_space<vmem>>, %arg10: memref<64x128xbf16, #tpu.memory_space<vmem>>, %arg11: memref<16x128xf32, #tpu.memory_space<vmem>>) attributes {dimension_semantics = [#tpu.dimension_semantics<parallel>], iteration_bounds = array<i64: 2>, scalar_prefetch = 0 : i64, scratch_operands = 0 : i64, tpu.core_type = #tpu.core_type<tc>, window_params = [{transform_indices = @transform_0, window_bounds = array<i64: 16, 64>}, {transform_indices = @transform_1, window_bounds = array<i64: 16, 64>}, {pipeline_mode = #tpu.pipeline_mode<synchronous>, transform_indices = @transform_2, window_bounds = array<i64: 64, 64>}, {pipeline_mode = #tpu.pipeline_mode<synchronous>, transform_indices = @transform_3, window_bounds = array<i64: 64, 64>}, {pipeline_mode = #tpu.pipeline_mode<synchronous>, transform_indices = @transform_4, window_bounds = array<i64: 1, 64>}, {pipeline_mode = #tpu.pipeline_mode<synchronous>, transform_indices = @transform_5, window_bounds = array<i64: 64, 64>}, {pipeline_mode = #tpu.pipeline_mode<synchronous>, transform_indices = @transform_6, window_bounds = array<i64: 1, 64>}, {pipeline_mode = #tpu.pipeline_mode<synchronous>, transform_indices = @transform_7, window_bounds = array<i64: 64, 64>}, {pipeline_mode = #tpu.pipeline_mode<synchronous>, transform_indices = @transform_8, window_bounds = array<i64: 1, 64>}, {pipeline_mode = #tpu.pipeline_mode<synchronous>, transform_indices = @transform_9, window_bounds = array<i64: 64, 128>}, {transform_indices = @transform_10, window_bounds = array<i64: 16, 128>}]} {
    %c0 = arith.constant 0 : index
    %c0_0 = arith.constant 0 : index
    %0 = vector.load %arg1[%c0, %c0_0] : memref<16x64xf32, #tpu.memory_space<vmem>>, vector<16x64xf32>
    %1 = arith.truncf %0 : vector<16x64xf32> to vector<16x64xbf16>
    %c0_1 = arith.constant 0 : index
    %c0_2 = arith.constant 0 : index
    %2 = vector.load %arg3[%c0_1, %c0_2] : memref<64x64xbf16, #tpu.memory_space<vmem>>, vector<64x64xbf16>
    %cst = arith.constant dense<0.000000e+00> : vector<16x64xf32>
    %3 = tpu.matmul %1, %2, %cst {dimension_numbers = #tpu.dot_dimension_numbers<[1], [0], [0], [1], [0, 0, 1, 1], [], []>} : vector<16x64xbf16>, vector<64x64xbf16>, vector<16x64xf32> -> vector<16x64xf32>
    %c0_3 = arith.constant 0 : index
    %c0_4 = arith.constant 0 : index
    %4 = vector.load %arg2[%c0_3, %c0_4] : memref<16x64xbf16, #tpu.memory_space<vmem>>, vector<16x64xbf16>
    %c0_5 = arith.constant 0 : index
    %c0_6 = arith.constant 0 : index
    %5 = vector.load %arg4[%c0_5, %c0_6] : memref<64x64xbf16, #tpu.memory_space<vmem>>, vector<64x64xbf16>
    %cst_7 = arith.constant dense<0.000000e+00> : vector<16x64xf32>
    %6 = tpu.matmul %4, %5, %cst_7 {dimension_numbers = #tpu.dot_dimension_numbers<[1], [0], [0], [1], [0, 0, 1, 1], [], []>} : vector<16x64xbf16>, vector<64x64xbf16>, vector<16x64xf32> -> vector<16x64xf32>
    %7 = arith.addf %3, %6 : vector<16x64xf32>
    %c0_8 = arith.constant 0 : index
    %c0_9 = arith.constant 0 : index
    %8 = vector.load %arg5[%c0_8, %c0_9] : memref<1x64xf32, #tpu.memory_space<vmem>>, vector<1x64xf32>
    %9 = vector.broadcast %8 : vector<1x64xf32> to vector<16x64xf32>
    %10 = arith.addf %7, %9 : vector<16x64xf32>
    %cst_10 = arith.constant 0.000000e+00 : f32
    %11 = vector.broadcast %cst_10 : f32 to vector<16x64xf32>
    %12 = arith.maximumf %10, %11 : vector<16x64xf32>
    %13 = arith.truncf %12 : vector<16x64xf32> to vector<16x64xbf16>
    %c0_11 = arith.constant 0 : index
    %c0_12 = arith.constant 0 : index
    %14 = vector.load %arg6[%c0_11, %c0_12] : memref<64x64xbf16, #tpu.memory_space<vmem>>, vector<64x64xbf16>
    %cst_13 = arith.constant dense<0.000000e+00> : vector<16x64xf32>
    %15 = tpu.matmul %13, %14, %cst_13 {dimension_numbers = #tpu.dot_dimension_numbers<[1], [0], [0], [1], [0, 0, 1, 1], [], []>} : vector<16x64xbf16>, vector<64x64xbf16>, vector<16x64xf32> -> vector<16x64xf32>
    %c0_14 = arith.constant 0 : index
    %c0_15 = arith.constant 0 : index
    %16 = vector.load %arg7[%c0_14, %c0_15] : memref<1x64xf32, #tpu.memory_space<vmem>>, vector<1x64xf32>
    %17 = vector.broadcast %16 : vector<1x64xf32> to vector<16x64xf32>
    %18 = arith.addf %15, %17 : vector<16x64xf32>
    %19 = arith.truncf %18 : vector<16x64xf32> to vector<16x64xbf16>
    %c0_16 = arith.constant 0 : index
    %c0_17 = arith.constant 0 : index
    %20 = vector.load %arg8[%c0_16, %c0_17] : memref<64x64xbf16, #tpu.memory_space<vmem>>, vector<64x64xbf16>
    %cst_18 = arith.constant dense<0.000000e+00> : vector<16x64xf32>
    %21 = tpu.matmul %19, %20, %cst_18 {dimension_numbers = #tpu.dot_dimension_numbers<[1], [0], [0], [1], [0, 0, 1, 1], [], []>} : vector<16x64xbf16>, vector<64x64xbf16>, vector<16x64xf32> -> vector<16x64xf32>
    %c0_19 = arith.constant 0 : index
    %c0_20 = arith.constant 0 : index
    %22 = vector.load %arg9[%c0_19, %c0_20] : memref<1x64xf32, #tpu.memory_space<vmem>>, vector<1x64xf32>
    %23 = vector.broadcast %22 : vector<1x64xf32> to vector<16x64xf32>
    %24 = arith.addf %21, %23 : vector<16x64xf32>
    %cst_21 = arith.constant 0.000000e+00 : f32
    %25 = vector.broadcast %cst_21 : f32 to vector<16x64xf32>
    %26 = arith.maximumf %24, %25 : vector<16x64xf32>
    %27 = arith.truncf %26 : vector<16x64xf32> to vector<16x64xbf16>
    %c0_22 = arith.constant 0 : index
    %c0_23 = arith.constant 0 : index
    %28 = vector.load %arg10[%c0_22, %c0_23] : memref<64x128xbf16, #tpu.memory_space<vmem>>, vector<64x128xbf16>
    %cst_24 = arith.constant dense<0.000000e+00> : vector<16x128xf32>
    %29 = tpu.matmul %27, %28, %cst_24 {dimension_numbers = #tpu.dot_dimension_numbers<[1], [0], [0], [1], [0, 0, 1, 1], [], []>} : vector<16x64xbf16>, vector<64x128xbf16>, vector<16x128xf32> -> vector<16x128xf32>
    %c0_25 = arith.constant 0 : index
    %c0_26 = arith.constant 0 : index
    %30 = vector.load %arg11[%c0_25, %c0_26] : memref<16x128xf32, #tpu.memory_space<vmem>>, vector<16x128xf32>
    tpu.vector_store %arg11[%c0_25, %c0_26], %29 {strides = array<i32>} : memref<16x128xf32, #tpu.memory_space<vmem>>, vector<16x128xf32>,
    return
  }
  func.func @transform_0(%arg0: i32) -> (i32, i32) {
    %c0_i32 = arith.constant 0 : i32
    %c0_i32_0 = arith.constant 0 : i32
    return %arg0, %c0_i32 : i32, i32
  }
  func.func @transform_1(%arg0: i32) -> (i32, i32) {
    %c0_i32 = arith.constant 0 : i32
    %c0_i32_0 = arith.constant 0 : i32
    return %arg0, %c0_i32 : i32, i32
  }
  func.func @transform_2(%arg0: i32) -> (i32, i32) {
    %c0_i32 = arith.constant 0 : i32
    %c0_i32_0 = arith.constant 0 : i32
    %c0_i32_1 = arith.constant 0 : i32
    return %c0_i32, %c0_i32_0 : i32, i32
  }
  func.func @transform_3(%arg0: i32) -> (i32, i32) {
    %c0_i32 = arith.constant 0 : i32
    %c0_i32_0 = arith.constant 0 : i32
    %c0_i32_1 = arith.constant 0 : i32
    return %c0_i32, %c0_i32_0 : i32, i32
  }
  func.func @transform_4(%arg0: i32) -> (i32, i32) {
    %c0_i32 = arith.constant 0 : i32
    %c0_i32_0 = arith.constant 0 : i32
    %c0_i32_1 = arith.constant 0 : i32
    return %c0_i32, %c0_i32_0 : i32, i32
  }
  func.func @transform_5(%arg0: i32) -> (i32, i32) {
    %c0_i32 = arith.constant 0 : i32
    %c0_i32_0 = arith.constant 0 : i32
    %c0_i32_1 = arith.constant 0 : i32
    return %c0_i32, %c0_i32_0 : i32, i32
  }
  func.func @transform_6(%arg0: i32) -> (i32, i32) {
    %c0_i32 = arith.constant 0 : i32
    %c0_i32_0 = arith.constant 0 : i32
    %c0_i32_1 = arith.constant 0 : i32
    return %c0_i32, %c0_i32_0 : i32, i32
  }
  func.func @transform_7(%arg0: i32) -> (i32, i32) {
    %c0_i32 = arith.constant 0 : i32
    %c0_i32_0 = arith.constant 0 : i32
    %c0_i32_1 = arith.constant 0 : i32
    return %c0_i32, %c0_i32_0 : i32, i32
  }
  func.func @transform_8(%arg0: i32) -> (i32, i32) {
    %c0_i32 = arith.constant 0 : i32
    %c0_i32_0 = arith.constant 0 : i32
    %c0_i32_1 = arith.constant 0 : i32
    return %c0_i32, %c0_i32_0 : i32, i32
  }
  func.func @transform_9(%arg0: i32) -> (i32, i32) {
    %c0_i32 = arith.constant 0 : i32
    %c0_i32_0 = arith.constant 0 : i32
    %c0_i32_1 = arith.constant 0 : i32
    return %c0_i32, %c0_i32_0 : i32, i32
  }
  func.func @transform_10(%arg0: i32) -> (i32, i32) {
    %c0_i32 = arith.constant 0 : i32
    %c0_i32_0 = arith.constant 0 : i32
    return %arg0, %c0_i32 : i32, i32
  }
}

</mosaic_0001>

<bundles_post_ra>
// kernel: gnn_policy_forward.7
= control target key start
LH: loop header
LB: loop body
LE: loop exit
PB: predicated region body
PF: predicated region fallthrough
CT: control target
= control target key end

     0   :  { %s663_s18 = smov 0   ;;  %s754_s0 = inlined_call_operand.vmem [shape: f32[32,128], index: 0, kind: input, shape index: {}]   ;;  %s755_s1 = inlined_call_operand.vmem [shape: f32[128,64], index: 1, kind: input, shape index: {}]   ;;  %s756_s2 = inlined_call_operand.vmem [shape: f32[1,64], index: 2, kind: input, shape index: {}]   ;;  %s757_s3 = inlined_call_operand.vmem [shape: bf16[64,64], index: 3, kind: input, shape index: {}]   ;;  %s758_s4 = inlined_call_operand.vmem [shape: f32[1,64], index: 4, kind: input, shape index: {}]   ;;  %s759_s5 = inlined_call_operand.vmem [shape: bf16[32,64], index: 5, kind: output, shape index: {}]  }
   0x1 LB: > { %s485_s19 = sadd.s32 4294967295, %s629_s18   ;;  %p489_p0 = scmp.ge.s32.totalorder %s629_s18, 1  ;;  %s629_s18 = sphi %s663_s18, %s15_s18  }
   0x2   : > { %p188_p1 = scmp.lt.s32.totalorder %s629_s18, 3 }
   0x4   : > { %p189_p2 = pnand %p489_p0, %p188_p1 }
   0x5   : > { %v231_v0 = vld [vmem:[%s755_s1] sm:$0xff] (!%p189_p2)  ;;  %v232_v1 = vld [vmem:[%s755_s1 + $0x8] sm:$0xff] (!%p189_p2)  ;;  %v233_v2 = vld [vmem:[%s755_s1 + $0x10] sm:$0xff] (!%p189_p2)  ;;  %s490_s26 = sshll.u32 (!%p189_p2), %s485_s19, 1  ;;  %v631_v5 = vmov (!%p189_p2), 0.0   ;;  %vm632_vm0 = vmmov (!%p189_p2), 0  }
   0x6   : > { %192 = sbr.rel (%p189_p2) target bundleno = 480 (0x1e0), region = 40  ;;  %v577_v3 = vpack.c.bf16 (!%p189_p2), %v232_v1, %v231_v0  ;;  %v234_v4 = vld [vmem:[%s755_s1 + $0x18] sm:$0xff] (!%p189_p2)  ;;  %p217_p3 = scmp.lt.s32.totalorder (!%p189_p2), %s490_s26, 3  ;;  %565 = vmatprep.subr.bf16.mxu1 (!%p189_p2), %v631_v5  ;;  %v235_v7 = vld [vmem:[%s755_s1 + $0x20] sm:$0xff] (!%p189_p2)  ;;  %v236_v8 = vld [vmem:[%s755_s1 + $0x28] sm:$0xff] (!%p189_p2)  ;;  %573 = vmatprep.mubr.msk.bf16.mxu1 (!%p189_p2), %vm632_vm0, %v631_v5  ;;  %vm371_vm1 = vcmask (!%p189_p2), 523264  }
   0x7   : > { %v581_v6 = vpack.c.bf16 (!%p189_p2), %v234_v4, %v233_v2  ;;  %v237_v9 = vld [vmem:[%s755_s1 + $0x30] sm:$0xff] (!%p189_p2)  ;;  %v585_v10 = vpack.c.bf16 (!%p189_p2), %v236_v8, %v235_v7  ;;  %v238_v11 = vld [vmem:[%s755_s1 + $0x38] sm:$0xff] (!%p189_p2)  ;;  %v619_v12 = vld [vmem:[%s757_s3] sm:$0xff] (!%p189_p2)   ;;  %vm426_vm2 = vcmask (!%p189_p2), 519168  }
   0x8   : > { %578 = vmatprep.subr.bf16.mxu0 (!%p189_p2), %v577_v3  ;;  %566 = vmatpush3.bf16.msra.mxu1 (!%p189_p2), %v619_v12  ;;  %v620_v14 = vld [vmem:[%s757_s3 + $0x8] sm:$0xff] (!%p189_p2)   ;;  %v589_v15 = vpack.c.bf16 (!%p189_p2), %v238_v11, %v237_v9  ;;  %v239_v16 = vld [vmem:[%s755_s1 + $0x40] sm:$0xff] (!%p189_p2)  ;;  %v241_v19 = vld [vmem:[%s755_s1 + $0x50] sm:$0xff] (!%p189_p2) }
   0x9   : > { %580 = vmatpush3.bf16.msra.mxu0 (!%p189_p2), %v577_v3  ;;  %567 = vmatprep.subr.bf16.mxu1 (!%p189_p2), %v631_v5  ;;  %v240_v17 = vld [vmem:[%s755_s1 + $0x48] sm:$0xff] (!%p189_p2)  ;;  %v242_v20 = vld [vmem:[%s755_s1 + $0x58] sm:$0xff] (!%p189_p2)  ;;  %v243_v22 = vld [vmem:[%s755_s1 + $0x60] sm:$0xff] (!%p189_p2) }
   0xa   : > { %582 = vmatprep.subr.bf16.mxu0 (!%p189_p2), %v581_v6  ;;  %v593_v18 = vpack.c.bf16 (!%p189_p2), %v240_v17, %v239_v16  ;;  %v597_v21 = vpack.c.bf16 (!%p189_p2), %v242_v20, %v241_v19  ;;  %v244_v23 = vld [vmem:[%s755_s1 + $0x68] sm:$0xff] (!%p189_p2)  ;;  %v245_v25 = vld [vmem:[%s755_s1 + $0x70] sm:$0xff] (!%p189_p2)  ;;  %v246_v26 = vld [vmem:[%s755_s1 + $0x78] sm:$0xff] (!%p189_p2) }
   0xb   : > { %v601_v24 = vpack.c.bf16 (!%p189_p2), %v244_v23, %v243_v22  ;;  %v605_v27 = vpack.c.bf16 (!%p189_p2), %v246_v26, %v245_v25  ;;  %v621_v29 = vld [vmem:[%s757_s3 + $0x10] sm:$0xff] (!%p189_p2)   ;;  %v622_v30 = vld [vmem:[%s757_s3 + $0x18] sm:$0xff] (!%p189_p2)   ;;  %v494_v31 = vld [vmem:[%s756_s2] ss:$0 sm:$0xff] (!%p189_p2) }
   0xc   : > { %568 = vmatpush3.bf16.msra.mxu1 (!%p189_p2), %v620_v14  ;;  %v495_v39 = vld [vmem:[%s758_s4] ss:$0 sm:$0xff] (!%p189_p2) }
   0xd   : > { %s761_s26 = smov (!%p217_p3, %s490_s26), 3  ;;  %584 = vmatpush3.bf16.msra.mxu0 %v581_v6  ;;  %569 = vmatprep.subr.bf16.mxu1 %v631_v5 }
   0xe   : > { %s491_s12 = sshll.u32 %s761_s26, 3  ;;  %586 = vmatprep.subr.bf16.mxu0 %v585_v10  ;;  %s493_s22 = sshll.u32 %s761_s26, 2 }
   0xf   : > { %s704_s17 = scalar_lea.vmem %s754_s0, %s491_s12  ;;  %s226_s25 = scalar_lea.vmem %s759_s5, %s493_s22 }
  0x10   : > { %v229_v13 = vld [vmem:[%s704_s17] sm:$0xff]  ;;  %v230_v28 = vld [vmem:[%s704_s17 + $0x8] sm:$0xff]  ;;  %570 = vmatpush3.bf16.msra.mxu1 %v621_v29 }
  0x11   : > { %562 = vmatprep.mubr.f32.mxu0 %v229_v13  ;;  %588 = vmatpush3.bf16.msra.mxu0 %v585_v10 }
  0x12   : > { %590 = vmatprep.subr.bf16.mxu0 %v589_v15  ;;  %571 = vmatprep.subr.bf16.mxu1 %v631_v5 }
  0x14   : > { %572 = vmatpush3.bf16.msra.mxu1 %v622_v30 }
  0x15   : > { %592 = vmatpush3.bf16.msra.mxu0 %v589_v15 }
  0x16   : > { %594 = vmatprep.subr.bf16.mxu0 %v593_v18 }
  0x19   : > { %596 = vmatpush3.bf16.msra.mxu0 %v593_v18 }
  0x1a   : > { %598 = vmatprep.subr.bf16.mxu0 %v597_v21 }
  0x1d   : > { %600 = vmatpush3.bf16.msra.mxu0 %v597_v21 }
  0x1e   : > { %602 = vmatprep.subr.bf16.mxu0 %v601_v24 }
  0x21   : > { %604 = vmatpush3.bf16.msra.mxu0 %v601_v24 }
  0x22   : > { %606 = vmatprep.subr.bf16.mxu0 %v605_v27 }
  0x25   : > { %608 = vmatpush3.bf16.msra.mxu0 %v605_v27 }
  0x28   : > { %563 = vmatmul.mubr.f32.vlgmr.msra.gmra.mrb[0].mxu0 %v230_v28 }
  0xfb   : > { %v564_v32 = vpop.f32.mrb[0].mxu0 }
  0xfc   : > { %v326_v33 = vadd.f32 %v564_v32, %v494_v31  ;;  %v320_v34 = vpop.f32.mrb[1].mxu0 }
  0xfd   : > { %v321_v35 = vadd.f32 %v494_v31, %v320_v34 }
  0xfe   : > { %v330_v36 = vmax.f32 %v326_v33, 0.0 }
  0xff   : > { %v329_v37 = vmax.f32 %v321_v35, 0.0 }
 0x101   : > { %v331_v38 = vpack.c.bf16 %v330_v36, %v329_v37 }
 0x103   : > { %574 = vmatmul.mubr.msk.bf16.vlgmr.msra.gmra.mrb[0].mxu1 %vm371_vm1, %v331_v38 }
 0x1d6   : > { %v409_v40 = vpop.f32.mrb[0].mxu1 }
 0x1d7   : > { %v410_v41 = vadd.f32 %v495_v39, %v409_v40  ;;  %v575_v42 = vpop.f32.mrb[1].mxu1 }
 0x1d8   : > { %v412_v43 = vpop.f32.mrb[2].mxu1 }
 0x1d9   : > { %v416_v44 = vmax.f32 %v410_v41, 0.0  ;;  %v413_v45 = vadd.f32 %v495_v39, %v412_v43  ;;  %v576_v46 = vpop.f32.mrb[3].mxu1 }
 0x1db   : > { %v505_v47 = vpack.c.bf16 %v416_v44, %v416_v44  ;;  %v417_v48 = vmax.f32 %v413_v45, 0.0 }
 0x1dd   : > { %427 = vst.msk [vmem:[%s226_s25] sm:$0xf] %vm426_vm2, %v505_v47  ;;  %v506_v49 = vpack.c.bf16 %v417_v48, %v417_v48 }
 0x1df   : > { %428 = vst.msk [vmem:[%s226_s25 + $0x4] sm:$0xf] %vm426_vm2, %v506_v49 }
 0x1e0 PF: > { %s15_s18 = sadd.s32 1, %s629_s18  }
 0x1e1   : > { %p12_p4 = scmp.ge.s32.totalorder %s15_s18, 4  }
 0x1e3   :  { %14 = sbr.rel (!%p12_p4) target bundleno = 1 (0x1), region = 70 }

// kernel: gnn_policy_forward.6
= control target key start
LH: loop header
LB: loop body
LE: loop exit
PB: predicated region body
PF: predicated region fallthrough
CT: control target
= control target key end

     0   :  { %v344_v3 = vmov 0.0   ;;  %vm345_vm0 = vmmov 0   ;;  %vm163_vm1 = vcmask 523264   ;;  %vm218_vm2 = vcmask 519168   ;;  %s454_s1 = inlined_call_operand.vmem [shape: f32[128,64], index: 1, kind: input, shape index: {}]   ;;  %s455_s0 = inlined_call_operand.vmem [shape: f32[16,128], index: 0, kind: input, shape index: {}]   ;;  %s456_s3 = inlined_call_operand.vmem [shape: bf16[64,64], index: 3, kind: input, shape index: {}]   ;;  %s457_s2 = inlined_call_operand.vmem [shape: f32[1,64], index: 2, kind: input, shape index: {}]   ;;  %s458_s4 = inlined_call_operand.vmem [shape: f32[1,64], index: 4, kind: input, shape index: {}]   ;;  %s459_s5 = inlined_call_operand.vmem [shape: bf16[16,64], index: 5, kind: output, shape index: {}]  }
   0x1   :  { %v23_v0 = vld [vmem:[%s454_s1] sm:$0xff]  ;;  %v24_v1 = vld [vmem:[%s454_s1 + $0x8] sm:$0xff]  ;;  %v25_v2 = vld [vmem:[%s454_s1 + $0x10] sm:$0xff]  ;;  %294 = vmatprep.subr.bf16.mxu1 %v344_v3  ;;  %302 = vmatprep.mubr.msk.bf16.mxu1 %vm345_vm0, %v344_v3 }
   0x2   :  { %v306_v4 = vpack.c.bf16 %v24_v1, %v23_v0  ;;  %v26_v5 = vld [vmem:[%s454_s1 + $0x18] sm:$0xff]  ;;  %v27_v7 = vld [vmem:[%s454_s1 + $0x20] sm:$0xff]  ;;  %v28_v8 = vld [vmem:[%s454_s1 + $0x28] sm:$0xff] }
   0x3   :  { %v310_v6 = vpack.c.bf16 %v26_v5, %v25_v2  ;;  %v314_v9 = vpack.c.bf16 %v28_v8, %v27_v7  ;;  %v29_v10 = vld [vmem:[%s454_s1 + $0x30] sm:$0xff]  ;;  %v30_v11 = vld [vmem:[%s454_s1 + $0x38] sm:$0xff]  ;;  %v21_v12 = vld [vmem:[%s455_s0] sm:$0xff] }
   0x4   :  { %307 = vmatprep.subr.bf16.mxu0 %v306_v4  ;;  %291 = vmatprep.mubr.f32.mxu0 %v21_v12  ;;  %v340_v13 = vld [vmem:[%s456_s3] sm:$0xff]   ;;  %v341_v14 = vld [vmem:[%s456_s3 + $0x8] sm:$0xff]   ;;  %v318_v15 = vpack.c.bf16 %v30_v11, %v29_v10  ;;  %v33_v19 = vld [vmem:[%s454_s1 + $0x50] sm:$0xff] }
   0x5   :  { %309 = vmatpush3.bf16.msra.mxu0 %v306_v4  ;;  %295 = vmatpush3.bf16.msra.mxu1 %v340_v13  ;;  %v31_v16 = vld [vmem:[%s454_s1 + $0x40] sm:$0xff]  ;;  %v32_v17 = vld [vmem:[%s454_s1 + $0x48] sm:$0xff]  ;;  %v34_v20 = vld [vmem:[%s454_s1 + $0x58] sm:$0xff] }
   0x6   :  { %311 = vmatprep.subr.bf16.mxu0 %v310_v6  ;;  %296 = vmatprep.subr.bf16.mxu1 %v344_v3  ;;  %v322_v18 = vpack.c.bf16 %v32_v17, %v31_v16  ;;  %v326_v21 = vpack.c.bf16 %v34_v20, %v33_v19  ;;  %v35_v22 = vld [vmem:[%s454_s1 + $0x60] sm:$0xff]  ;;  %v36_v23 = vld [vmem:[%s454_s1 + $0x68] sm:$0xff]  ;;  %v37_v25 = vld [vmem:[%s454_s1 + $0x70] sm:$0xff] }
   0x7   :  { %v330_v24 = vpack.c.bf16 %v36_v23, %v35_v22  ;;  %v38_v26 = vld [vmem:[%s454_s1 + $0x78] sm:$0xff]  ;;  %v22_v28 = vld [vmem:[%s455_s0 + $0x8] sm:$0xff]  ;;  %v342_v29 = vld [vmem:[%s456_s3 + $0x10] sm:$0xff]  }
   0x8   :  { %v334_v27 = vpack.c.bf16 %v38_v26, %v37_v25  ;;  %v343_v30 = vld [vmem:[%s456_s3 + $0x18] sm:$0xff]   ;;  %v225_v31 = vld [vmem:[%s457_s2] ss:$0 sm:$0xff] }
   0x9   :  { %313 = vmatpush3.bf16.msra.mxu0 %v310_v6  ;;  %297 = vmatpush3.bf16.msra.mxu1 %v341_v14  ;;  %v226_v39 = vld [vmem:[%s458_s4] ss:$0 sm:$0xff] }
   0xa   :  { %315 = vmatprep.subr.bf16.mxu0 %v314_v9  ;;  %298 = vmatprep.subr.bf16.mxu1 %v344_v3 }
   0xd   :  { %317 = vmatpush3.bf16.msra.mxu0 %v314_v9  ;;  %299 = vmatpush3.bf16.msra.mxu1 %v342_v29 }
   0xe   :  { %319 = vmatprep.subr.bf16.mxu0 %v318_v15  ;;  %300 = vmatprep.subr.bf16.mxu1 %v344_v3 }
  0x11   :  { %321 = vmatpush3.bf16.msra.mxu0 %v318_v15  ;;  %301 = vmatpush3.bf16.msra.mxu1 %v343_v30 }
  0x12   :  { %323 = vmatprep.subr.bf16.mxu0 %v322_v18 }
  0x15   :  { %325 = vmatpush3.bf16.msra.mxu0 %v322_v18 }
  0x16   :  { %327 = vmatprep.subr.bf16.mxu0 %v326_v21 }
  0x19   :  { %329 = vmatpush3.bf16.msra.mxu0 %v326_v21 }
  0x1a   :  { %331 = vmatprep.subr.bf16.mxu0 %v330_v24 }
  0x1d   :  { %333 = vmatpush3.bf16.msra.mxu0 %v330_v24 }
  0x1e   :  { %335 = vmatprep.subr.bf16.mxu0 %v334_v27 }
  0x21   :  { %337 = vmatpush3.bf16.msra.mxu0 %v334_v27 }
  0x24   :  { %292 = vmatmul.mubr.f32.vlgmr.msra.gmra.mrb[0].mxu0 %v22_v28 }
  0xf7   :  { %v293_v32 = vpop.f32.mrb[0].mxu0 }
  0xf8   :  { %v118_v33 = vadd.f32 %v293_v32, %v225_v31  ;;  %v112_v34 = vpop.f32.mrb[1].mxu0 }
  0xf9   :  { %v113_v35 = vadd.f32 %v225_v31, %v112_v34 }
  0xfa   :  { %v122_v36 = vmax.f32 %v118_v33, 0.0 }
  0xfb   :  { %v121_v37 = vmax.f32 %v113_v35, 0.0 }
  0xfd   :  { %v123_v38 = vpack.c.bf16 %v122_v36, %v121_v37 }
  0xff   :  { %303 = vmatmul.mubr.msk.bf16.vlgmr.msra.gmra.mrb[0].mxu1 %vm163_vm1, %v123_v38 }
 0x1d2   :  { %v201_v40 = vpop.f32.mrb[0].mxu1 }
 0x1d3   :  { %v202_v41 = vadd.f32 %v226_v39, %v201_v40  ;;  %v304_v42 = vpop.f32.mrb[1].mxu1 }
 0x1d4   :  { %v204_v43 = vpop.f32.mrb[2].mxu1 }
 0x1d5   :  { %v208_v44 = vmax.f32 %v202_v41, 0.0  ;;  %v205_v45 = vadd.f32 %v226_v39, %v204_v43  ;;  %v305_v46 = vpop.f32.mrb[3].mxu1 }
 0x1d7   :  { %v234_v47 = vpack.c.bf16 %v208_v44, %v208_v44  ;;  %v209_v48 = vmax.f32 %v205_v45, 0.0 }
 0x1d9   :  { %219 = vst.msk [vmem:[%s459_s5] sm:$0xf] %vm218_vm2, %v234_v47  ;;  %v235_v49 = vpack.c.bf16 %v209_v48, %v209_v48 }
 0x1db   :  { %220 = vst.msk [vmem:[%s459_s5 + $0x4] sm:$0xf] %vm218_vm2, %v235_v49 }

// kernel: gnn_policy_forward.8
= control target key start
LH: loop header
LB: loop body
LE: loop exit
PB: predicated region body
PF: predicated region fallthrough
CT: control target
= control target key end

     0   :  { %s950_s30 = smov 0   ;;  %s1038_s0 = inlined_call_operand.vmem [shape: bf16[48,64], index: 0, kind: input, shape index: {}]   ;;  %s1039_s1 = inlined_call_operand.vmem [shape: bf16[48,64], index: 1, kind: input, shape index: {}]   ;;  %s1040_s2 = inlined_call_operand.vmem [shape: f32[48,2], index: 2, kind: input, shape index: {}]   ;;  %s1041_s3 = inlined_call_operand.vmem [shape: bf16[64,64], index: 3, kind: input, shape index: {}]   ;;  %s1042_s4 = inlined_call_operand.vmem [shape: bf16[64,64], index: 4, kind: input, shape index: {}]   ;;  %s1043_s5 = inlined_call_operand.vmem [shape: f32[2,64], index: 5, kind: input, shape index: {}]   ;;  %s1044_s6 = inlined_call_operand.vmem [shape: f32[1,64], index: 6, kind: input, shape index: {}]   ;;  %s1045_s7 = inlined_call_operand.vmem [shape: bf16[64,64], index: 7, kind: input, shape index: {}]   ;;  %s1046_s8 = inlined_call_operand.vmem [shape: f32[1,64], index: 8, kind: input, shape index: {}]   ;;  %s1047_s9 = inlined_call_operand.vmem [shape: f32[48,64], index: 9, kind: output, shape index: {}]  }
   0x1 LB: > { %s773_s10 = sadd.s32 4294967295, %s894_s30   ;;  %p777_p0 = scmp.ge.s32.totalorder %s894_s30, 1  ;;  %s894_s30 = sphi %s950_s30, %s19_s30  }
   0x2   : > { %p310_p1 = scmp.lt.s32.totalorder %s894_s30, 4 }
   0x4   : > { %p311_p2 = pnand %p777_p0, %p310_p1 }
   0x5   : > { %v874_v0 = vld [vmem:[%s1042_s4] sm:$0xff] (!%p311_p2)   ;;  %v896_v1 = vmov (!%p311_p2), 0.0   ;;  %v876_v3 = vld [vmem:[%s1042_s4 + $0x8] sm:$0xff] (!%p311_p2)   ;;  %vm897_vm0 = vmmov (!%p311_p2), 0   ;;  %s778_s17 = sshll.u32 (!%p311_p2), %s773_s10, 1  ;;  %v878_v5 = vld [vmem:[%s1042_s4 + $0x10] sm:$0xff] (!%p311_p2)   ;;  %v561_v19 = vlaneseq (!%p311_p2) }
   0x6   : > { %314 = sbr.rel (%p311_p2) target bundleno = 467 (0x1d3), region = 56  ;;  %823 = vmatprep.subr.bf16.mxu0 (!%p311_p2), %v896_v1  ;;  %835 = vmatprep.subr.bf16.mxu1 (!%p311_p2), %v896_v1  ;;  %v875_v2 = vld [vmem:[%s1041_s3] sm:$0xff] (!%p311_p2)   ;;  %v877_v4 = vld [vmem:[%s1041_s3 + $0x8] sm:$0xff] (!%p311_p2)   ;;  %p357_p3 = scmp.lt.s32.totalorder (!%p311_p2), %s778_s17, 5  ;;  %v879_v6 = vld [vmem:[%s1041_s3 + $0x10] sm:$0xff] (!%p311_p2)   ;;  %v898_v7 = vmov (!%p311_p2), 0  }
   0x7   : > { %824 = vmatpush3.bf16.msra.mxu0 (!%p311_p2), %v874_v0  ;;  %831 = vmatprep.mubr.msk.bf16.mxu0 (!%p311_p2), %vm897_vm0, %v896_v1  ;;  %v880_v8 = vld [vmem:[%s1042_s4 + $0x18] sm:$0xff] (!%p311_p2)   ;;  %v899_v9 = vmov (!%p311_p2), 1   ;;  %vm430_vm1 = vcmask (!%p311_p2), 523264   ;;  %v884_v15 = vld [vmem:[%s1045_s7] sm:$0xff] (!%p311_p2)   ;;  %v885_v16 = vld [vmem:[%s1045_s7 + $0x8] sm:$0xff] (!%p311_p2)   ;;  %v562_v20 = vshrl.u32 (!%p311_p2), %v561_v19, 7 }
   0x8   : > { %836 = vmatpush3.bf16.msra.mxu1 (!%p311_p2), %v875_v2  ;;  %825 = vmatprep.subr.bf16.mxu0 (!%p311_p2), %v896_v1  ;;  %v881_v10 = vld [vmem:[%s1041_s3 + $0x18] sm:$0xff] (!%p311_p2)   ;;  %v886_v17 = vld [vmem:[%s1045_s7 + $0x10] sm:$0xff] (!%p311_p2)   ;;  %v550_v24 = vld [vmem:[%s1043_s5] sm:$0x3] (!%p311_p2)  ;;  %s805_s15 = sshll.u32 (!%p311_p2), %s773_s10, 4 }
   0x9   : > { %837 = vmatprep.subr.bf16.mxu1 (!%p311_p2), %v896_v1  ;;  %843 = vmatprep.mubr.msk.bf16.mxu1 (!%p311_p2), %vm897_vm0, %v896_v1  ;;  %v887_v18 = vld [vmem:[%s1045_s7 + $0x18] sm:$0xff] (!%p311_p2)   ;;  %v563_v22 = vsub.s32 (!%p311_p2), 0, %v562_v20  ;;  %v579_v25 = vsub.s32 (!%p311_p2), 1, %v562_v20  ;;  %v798_v44 = vld [vmem:[%s1044_s6] ss:$0 sm:$0xff] (!%p311_p2)  ;;  %v684_v54 = vstv (!%p311_p2), %s805_s15  ;;  %v683_v55 = vadd.s32 (!%p311_p2), 8, %v562_v20 }
   0xa   : > { %871 = vset.pattern.permute.xlu0 (!%p311_p2), %v898_v7  ;;  %872 = vset.pattern.permute.xlu1 (!%p311_p2), %v899_v9  ;;  %v685_v56 = vadd.s32 (!%p311_p2), %v684_v54, %v562_v20  ;;  %v799_v57 = vld [vmem:[%s1046_s8] ss:$0 sm:$0xff] (!%p311_p2) }
   0xb   : > { %826 = vmatpush3.bf16.msra.mxu0 (!%p311_p2), %v876_v3  ;;  %v564_v26 = vrot.slane (!%p311_p2), %v550_v24, %v563_v22  ;;  %v580_v28 = vrot.slane (!%p311_p2), %v550_v24, %v579_v25  ;;  %v686_v58 = vadd.s32 (!%p311_p2), %v684_v54, %v683_v55 }
   0xc   : > { %838 = vmatpush3.bf16.msra.mxu1 (!%p311_p2), %v877_v4  ;;  %827 = vmatprep.subr.bf16.mxu0 (!%p311_p2), %v896_v1  ;;  %vm687_vm2 = vcmp.lt.s32.totalorder (!%p311_p2), %v685_v56, 40 }
   0xd   : > { %s1049_s17 = smov (!%p357_p3, %s778_s17), 5  ;;  %839 = vmatprep.subr.bf16.mxu1 %v896_v1  ;;  %vm688_vm3 = vcmp.lt.s32.totalorder %v686_v58, 40 }
   0xe   : > { %s779_s24 = sshll.u32 %s1049_s17, 2  ;;  %s783_s14 = sshll.u32 %s1049_s17, 3 }
   0xf   : > { %s366_s27 = scalar_lea.vmem %s1039_s1, %s779_s24  ;;  %s360_s13 = scalar_lea.vmem %s1038_s0, %s779_s24  ;;  %828 = vmatpush3.bf16.msra.mxu0 %v878_v5 }
  0x10   : > { %s372_s20 = scalar_lea.vmem %s1040_s2, %s783_s14  ;;  %840 = vmatpush3.bf16.msra.mxu1 %v879_v6  ;;  %829 = vmatprep.subr.bf16.mxu0 %v896_v1  ;;  %v882_v11 = vld [vmem:[%s366_s27] sm:$0xff]   ;;  %s378_s21 = scalar_lea.vmem %s1047_s9, %s783_s14 }
  0x11   : > { %v548_v12 = vld [vmem:[%s372_s20] sm:$0xff]  ;;  %841 = vmatprep.subr.bf16.mxu1 %v896_v1  ;;  %v549_v13 = vld [vmem:[%s372_s20 + $0x8] sm:$0xff] }
  0x12   : > { %553 = vperm.xlu0 %871, %v548_v12   ;;  %570 = vperm.xlu1 %872, %v548_v12   ;;  %v883_v14 = vld [vmem:[%s360_s13] sm:$0xff]  }
  0x13   : > { %830 = vmatpush3.bf16.msra.mxu0 %v880_v8 }
  0x14   : > { %842 = vmatpush3.bf16.msra.mxu1 %v881_v10  ;;  %847 = vmatprep.subr.bf16.mxu0 %v896_v1 }
  0x16   : > { %558 = vperm.xlu0 %871, %v549_v13   ;;  %832 = vmatmul.mubr.msk.bf16.vlgmr.msra.gmra.mrb[0].mxu0 %vm430_vm1, %v882_v11 }
  0x17   : > { %574 = vperm.xlu1 %872, %v549_v13   ;;  %844 = vmatmul.mubr.msk.bf16.vlgmr.msra.gmra.mrb[0].mxu1 %vm430_vm1, %v883_v14 }
  0x18   : > { %855 = vmatprep.mubr.msk.bf16.mxu0 %vm897_vm0, %v896_v1  ;;  %848 = vmatpush3.bf16.msra.mxu0 %v884_v15 }
  0x19   : > { %849 = vmatprep.subr.bf16.mxu0 %v896_v1 }
  0x1a   : > { %873 = vset.pattern.permute.xlu0 %v899_v9 }
  0x1c   : > { %850 = vmatpush3.bf16.msra.mxu0 %v885_v16 }
  0x1d   : > { %851 = vmatprep.subr.bf16.mxu0 %v896_v1 }
  0x20   : > { %852 = vmatpush3.bf16.msra.mxu0 %v886_v17 }
  0x21   : > { %853 = vmatprep.subr.bf16.mxu0 %v896_v1 }
  0x24   : > { %854 = vmatpush3.bf16.msra.mxu0 %v887_v18 }
  0x91   : > { %v554_v21 = vpop.permute.xlu0 %553  ;;  %v571_v23 = vpop.permute.xlu1 %570 }
  0x92   : > { %v565_v33 = vmul.f32 %v564_v26, %v554_v21  ;;  %v581_v39 = vmul.f32 %v580_v28, %v571_v23 }
  0x95   : > { %v559_v27 = vpop.permute.xlu0 %558 }
  0x96   : > { %v575_v29 = vpop.permute.xlu1 %574  ;;  %v566_v40 = vmul.f32 %v564_v26, %v559_v27 }
  0x97   : > { %v582_v45 = vmul.f32 %v580_v28, %v575_v29 }
  0xe9   : > { %v468_v30 = vpop.f32.mrb[0].mxu0 }
  0xea   : > { %v541_v31 = vpop.f32.mrb[0].mxu1  ;;  %v833_v32 = vpop.f32.mrb[1].mxu0 }
  0xeb   : > { %v542_v34 = vadd.f32 %v541_v31, %v468_v30  ;;  %v845_v35 = vpop.f32.mrb[1].mxu1  ;;  %v471_v36 = vpop.f32.mrb[2].mxu0 }
  0xec   : > { %v544_v37 = vpop.f32.mrb[2].mxu1  ;;  %v834_v38 = vpop.f32.mrb[3].mxu0 }
  0xed   : > { %v567_v41 = vadd.f32 %v565_v33, %v542_v34  ;;  %v545_v42 = vadd.f32 %v544_v37, %v471_v36  ;;  %v846_v43 = vpop.f32.mrb[3].mxu1 }
  0xef   : > { %v583_v46 = vadd.f32 %v581_v39, %v567_v41  ;;  %v568_v47 = vadd.f32 %v566_v40, %v545_v42 }
  0xf1   : > { %v592_v48 = vadd.f32 %v798_v44, %v583_v46  ;;  %v584_v49 = vadd.f32 %v582_v45, %v568_v47 }
  0xf3   : > { %v593_v50 = vadd.f32 %v798_v44, %v584_v49  ;;  %v594_v51 = vmax.f32 %v592_v48, 0.0 }
  0xf5   : > { %v595_v52 = vmax.f32 %v593_v50, 0.0 }
  0xf7   : > { %v596_v53 = vpack.c.bf16 %v595_v52, %v594_v51 }
  0xf9   : > { %856 = vmatmul.mubr.msk.bf16.vlgmr.msra.gmra.mrb[4].mxu0 %vm430_vm1, %v596_v53 }
 0x1cc   : > { %v673_v59 = vpop.f32.mrb[4].mxu0 }
 0x1cd   : > { %v674_v60 = vadd.f32 %v799_v57, %v673_v59  ;;  %v857_v61 = vpop.f32.mrb[5].mxu0 }
 0x1ce   : > { %v676_v62 = vpop.f32.mrb[6].mxu0 }
 0x1cf   : > { %v689_v63 = vsel %vm687_vm2, %v674_v60, 0.0  ;;  %v677_v0 = vadd.f32 %v799_v57, %v676_v62  ;;  %v858_v1 = vpop.f32.mrb[7].mxu0 }
 0x1d0   : > { %691 = vst.msk [vmem:[%s378_s21] sm:$0xff] %vm430_vm1, %v689_v63 }
 0x1d1   : > { %v690_v2 = vsel %vm688_vm3, %v677_v0, 0.0 }
 0x1d2   : > { %692 = vst.msk [vmem:[%s378_s21 + $0x8] sm:$0xff] %vm430_vm1, %v690_v2 }
 0x1d3 PF: > { %s19_s30 = sadd.s32 1, %s894_s30  }
 0x1d4   : > { %p16_p4 = scmp.ge.s32.totalorder %s19_s30, 5  }
 0x1d6   :  { %18 = sbr.rel (!%p16_p4) target bundleno = 1 (0x1), region = 92 }

// kernel: gnn_policy_forward.9
= control target key start
LH: loop header
LB: loop body
LE: loop exit
PB: predicated region body
PF: predicated region fallthrough
CT: control target
= control target key end

     0   :  { %v388_v0 = vmov 0.0   ;;  %vm389_vm0 = vmmov 0   ;;  %vm77_vm1 = vcmask 523264   ;;  %vm293_vm2 = vcmask 519168   ;;  %s493_s3 = inlined_call_operand.vmem [shape: bf16[64,64], index: 3, kind: input, shape index: {}]   ;;  %s494_s2 = inlined_call_operand.vmem [shape: bf16[64,64], index: 2, kind: input, shape index: {}]   ;;  %s495_s0 = inlined_call_operand.vmem [shape: f32[16,64], index: 0, kind: input, shape index: {}]   ;;  %s496_s1 = inlined_call_operand.vmem [shape: bf16[16,64], index: 1, kind: input, shape index: {}]   ;;  %s497_s5 = inlined_call_operand.vmem [shape: bf16[64,64], index: 5, kind: input, shape index: {}]   ;;  %s498_s4 = inlined_call_operand.vmem [shape: f32[1,64], index: 4, kind: input, shape index: {}]   ;;  %s499_s6 = inlined_call_operand.vmem [shape: f32[1,64], index: 6, kind: input, shape index: {}]   ;;  %s500_s7 = inlined_call_operand.vmem [shape: bf16[16,64], index: 7, kind: output, shape index: {}]  }
   0x1   :  { %337 = vmatprep.subr.bf16.mxu0 %v388_v0  ;;  %349 = vmatprep.subr.bf16.mxu1 %v388_v0  ;;  %v375_v1 = vld [vmem:[%s493_s3] sm:$0xff]   ;;  %v377_v3 = vld [vmem:[%s493_s3 + $0x8] sm:$0xff]   ;;  %v379_v5 = vld [vmem:[%s493_s3 + $0x10] sm:$0xff]  }
   0x2   :  { %v376_v2 = vld [vmem:[%s494_s2] sm:$0xff]   ;;  %345 = vmatprep.mubr.msk.bf16.mxu0 %vm389_vm0, %v388_v0  ;;  %357 = vmatprep.mubr.msk.bf16.mxu1 %vm389_vm0, %v388_v0  ;;  %v378_v4 = vld [vmem:[%s494_s2 + $0x8] sm:$0xff]   ;;  %v380_v6 = vld [vmem:[%s494_s2 + $0x10] sm:$0xff]  }
   0x3   :  { %338 = vmatpush3.bf16.msra.mxu0 %v375_v1  ;;  %350 = vmatpush3.bf16.msra.mxu1 %v376_v2  ;;  %v381_v7 = vld [vmem:[%s493_s3 + $0x18] sm:$0xff]   ;;  %v27_v9 = vld [vmem:[%s495_s0] sm:$0xff]  ;;  %v28_v10 = vld [vmem:[%s495_s0 + $0x8] sm:$0xff] }
   0x4   :  { %339 = vmatprep.subr.bf16.mxu0 %v388_v0  ;;  %351 = vmatprep.subr.bf16.mxu1 %v388_v0  ;;  %v382_v8 = vld [vmem:[%s494_s2 + $0x18] sm:$0xff]   ;;  %v383_v11 = vld [vmem:[%s496_s1] sm:$0xff]   ;;  %v29_v12 = vpack.c.bf16 %v28_v10, %v27_v9  ;;  %v385_v14 = vld [vmem:[%s497_s5 + $0x8] sm:$0xff]  }
   0x5   :  { %v384_v13 = vld [vmem:[%s497_s5] sm:$0xff]   ;;  %v386_v15 = vld [vmem:[%s497_s5 + $0x10] sm:$0xff]   ;;  %v387_v16 = vld [vmem:[%s497_s5 + $0x18] sm:$0xff]  }
   0x6   :  { %v311_v19 = vld [vmem:[%s498_s4] ss:$0 sm:$0xff] }
   0x7   :  { %340 = vmatpush3.bf16.msra.mxu0 %v377_v3  ;;  %352 = vmatpush3.bf16.msra.mxu1 %v378_v4  ;;  %v312_v33 = vld [vmem:[%s499_s6] ss:$0 sm:$0xff] }
   0x8   :  { %341 = vmatprep.subr.bf16.mxu0 %v388_v0  ;;  %353 = vmatprep.subr.bf16.mxu1 %v388_v0 }
   0xb   :  { %342 = vmatpush3.bf16.msra.mxu0 %v379_v5  ;;  %354 = vmatpush3.bf16.msra.mxu1 %v380_v6 }
   0xc   :  { %343 = vmatprep.subr.bf16.mxu0 %v388_v0  ;;  %355 = vmatprep.subr.bf16.mxu1 %v388_v0 }
   0xf   :  { %344 = vmatpush3.bf16.msra.mxu0 %v381_v7  ;;  %356 = vmatpush3.bf16.msra.mxu1 %v382_v8 }
  0x10   :  { %361 = vmatprep.subr.bf16.mxu0 %v388_v0 }
  0x12   :  { %346 = vmatmul.mubr.msk.bf16.vlgmr.msra.gmra.mrb[0].mxu0 %vm77_vm1, %v383_v11  ;;  %358 = vmatmul.mubr.msk.bf16.vlgmr.msra.gmra.mrb[0].mxu1 %vm77_vm1, %v29_v12 }
  0x13   :  { %362 = vmatpush3.bf16.msra.mxu0 %v384_v13  ;;  %369 = vmatprep.mubr.msk.bf16.mxu0 %vm389_vm0, %v388_v0 }
  0x14   :  { %363 = vmatprep.subr.bf16.mxu0 %v388_v0 }
  0x17   :  { %364 = vmatpush3.bf16.msra.mxu0 %v385_v14 }
  0x18   :  { %365 = vmatprep.subr.bf16.mxu0 %v388_v0 }
  0x1b   :  { %366 = vmatpush3.bf16.msra.mxu0 %v386_v15 }
  0x1c   :  { %367 = vmatprep.subr.bf16.mxu0 %v388_v0 }
  0x1f   :  { %368 = vmatpush3.bf16.msra.mxu0 %v387_v16 }
  0xe5   :  { %v115_v17 = vpop.f32.mrb[0].mxu0  ;;  %v183_v18 = vpop.f32.mrb[0].mxu1 }
  0xe6   :  { %v347_v20 = vpop.f32.mrb[1].mxu0  ;;  %v184_v21 = vadd.f32 %v183_v18, %v115_v17  ;;  %v359_v22 = vpop.f32.mrb[1].mxu1 }
  0xe7   :  { %v118_v23 = vpop.f32.mrb[2].mxu0  ;;  %v186_v24 = vpop.f32.mrb[2].mxu1 }
  0xe8   :  { %v348_v25 = vpop.f32.mrb[3].mxu0  ;;  %v197_v26 = vadd.f32 %v311_v19, %v184_v21  ;;  %v187_v27 = vadd.f32 %v186_v24, %v118_v23  ;;  %v360_v28 = vpop.f32.mrb[3].mxu1 }
  0xea   :  { %v198_v29 = vadd.f32 %v311_v19, %v187_v27  ;;  %v199_v30 = vmax.f32 %v197_v26, 0.0 }
  0xec   :  { %v200_v31 = vmax.f32 %v198_v29, 0.0 }
  0xee   :  { %v201_v32 = vpack.c.bf16 %v200_v31, %v199_v30 }
  0xf0   :  { %370 = vmatmul.mubr.msk.bf16.vlgmr.msra.gmra.mrb[4].mxu0 %vm77_vm1, %v201_v32 }
 0x1c3   :  { %v278_v34 = vpop.f32.mrb[4].mxu0 }
 0x1c4   :  { %v279_v35 = vadd.f32 %v312_v33, %v278_v34  ;;  %v371_v36 = vpop.f32.mrb[5].mxu0 }
 0x1c5   :  { %v281_v37 = vpop.f32.mrb[6].mxu0 }
 0x1c6   :  { %v320_v38 = vpack.c.bf16 %v279_v35, %v279_v35  ;;  %v282_v39 = vadd.f32 %v312_v33, %v281_v37  ;;  %v372_v40 = vpop.f32.mrb[7].mxu0 }
 0x1c8   :  { %294 = vst.msk [vmem:[%s500_s7] sm:$0xf] %vm293_vm2, %v320_v38  ;;  %v321_v41 = vpack.c.bf16 %v282_v39, %v282_v39 }
 0x1ca   :  { %295 = vst.msk [vmem:[%s500_s7 + $0x4] sm:$0xf] %vm293_vm2, %v321_v41 }

// kernel: gnn_policy_forward.11
= control target key start
LH: loop header
LB: loop body
LE: loop exit
PB: predicated region body
PF: predicated region fallthrough
CT: control target
= control target key end

     0   :  { %s1100_s13 = smov 0   ;;  %s1232_s0 = inlined_call_operand.vmem [shape: f32[32,64], index: 0, kind: input, shape index: {}]   ;;  %s1233_s1 = inlined_call_operand.vmem [shape: bf16[32,64], index: 1, kind: input, shape index: {}]   ;;  %s1234_s2 = inlined_call_operand.vmem [shape: bf16[64,64], index: 2, kind: input, shape index: {}]   ;;  %s1235_s3 = inlined_call_operand.vmem [shape: bf16[64,64], index: 3, kind: input, shape index: {}]   ;;  %s1236_s4 = inlined_call_operand.vmem [shape: f32[1,64], index: 4, kind: input, shape index: {}]   ;;  %s1237_s5 = inlined_call_operand.vmem [shape: bf16[64,64], index: 5, kind: input, shape index: {}]   ;;  %s1238_s6 = inlined_call_operand.vmem [shape: f32[1,64], index: 6, kind: input, shape index: {}]   ;;  %s1239_s7 = inlined_call_operand.vmem [shape: bf16[64,64], index: 7, kind: input, shape index: {}]   ;;  %s1240_s8 = inlined_call_operand.vmem [shape: f32[1,64], index: 8, kind: input, shape index: {}]   ;;  %s1241_s9 = inlined_call_operand.vmem [shape: bf16[64,128], index: 9, kind: input, shape index: {}]   ;;  %s1242_s10 = inlined_call_operand.vmem [shape: f32[32,128], index: 10, kind: output, shape index: {}]  }
   0x1 LB: > { %s877_s14 = sadd.s32 4294967295, %s1041_s13   ;;  %p881_p0 = scmp.ge.s32.totalorder %s1041_s13, 1  ;;  %s1041_s13 = sphi %s1100_s13, %s20_s13  }
   0x2   : > { %p324_p1 = scmp.lt.s32.totalorder %s1041_s13, 3 }
   0x4   : > { %p325_p2 = pnand %p881_p0, %p324_p1 }
   0x5   : > { %v1014_v0 = vld [vmem:[%s1235_s3] sm:$0xff] (!%p325_p2)   ;;  %v1043_v1 = vmov (!%p325_p2), 0.0   ;;  %v1016_v3 = vld [vmem:[%s1235_s3 + $0x8] sm:$0xff] (!%p325_p2)   ;;  %vm1044_vm0 = vmmov (!%p325_p2), 0   ;;  %s882_s21 = sshll.u32 (!%p325_p2), %s877_s14, 1  ;;  %v1018_v5 = vld [vmem:[%s1235_s3 + $0x10] sm:$0xff] (!%p325_p2)  }
   0x6   : > { %328 = sbr.rel (%p325_p2) target bundleno = 898 (0x382), region = 60  ;;  %944 = vmatprep.subr.bf16.mxu0 (!%p325_p2), %v1043_v1  ;;  %956 = vmatprep.subr.bf16.mxu1 (!%p325_p2), %v1043_v1  ;;  %v1015_v2 = vld [vmem:[%s1234_s2] sm:$0xff] (!%p325_p2)   ;;  %v1017_v4 = vld [vmem:[%s1234_s2 + $0x8] sm:$0xff] (!%p325_p2)   ;;  %p368_p3 = scmp.lt.s32.totalorder (!%p325_p2), %s882_s21, 3  ;;  %v1019_v6 = vld [vmem:[%s1234_s2 + $0x10] sm:$0xff] (!%p325_p2)   ;;  %vm436_vm1 = vcmask (!%p325_p2), 523264  }
   0x7   : > { %945 = vmatpush3.bf16.msra.mxu0 (!%p325_p2), %v1014_v0  ;;  %952 = vmatprep.mubr.msk.bf16.mxu0 (!%p325_p2), %vm1044_vm0, %v1043_v1  ;;  %v1020_v7 = vld [vmem:[%s1235_s3 + $0x18] sm:$0xff] (!%p325_p2)   ;;  %v1023_v12 = vld [vmem:[%s1237_s5] sm:$0xff] (!%p325_p2)   ;;  %v1024_v14 = vld [vmem:[%s1237_s5 + $0x8] sm:$0xff] (!%p325_p2)  }
   0x8   : > { %957 = vmatpush3.bf16.msra.mxu1 (!%p325_p2), %v1015_v2  ;;  %946 = vmatprep.subr.bf16.mxu0 (!%p325_p2), %v1043_v1  ;;  %v1021_v8 = vld [vmem:[%s1234_s2 + $0x18] sm:$0xff] (!%p325_p2)   ;;  %v1025_v15 = vld [vmem:[%s1237_s5 + $0x10] sm:$0xff] (!%p325_p2)   ;;  %v1027_v17 = vld [vmem:[%s1239_s7] sm:$0xff] (!%p325_p2)  }
   0x9   : > { %958 = vmatprep.subr.bf16.mxu1 (!%p325_p2), %v1043_v1  ;;  %964 = vmatprep.mubr.msk.bf16.mxu1 (!%p325_p2), %vm1044_vm0, %v1043_v1  ;;  %v1026_v16 = vld [vmem:[%s1237_s5 + $0x18] sm:$0xff] (!%p325_p2)   ;;  %v1028_v18 = vld [vmem:[%s1239_s7 + $0x8] sm:$0xff] (!%p325_p2)   ;;  %v899_v21 = vld [vmem:[%s1236_s4] ss:$0 sm:$0xff] (!%p325_p2) }
   0xa   : > { %v1029_v35 = vld [vmem:[%s1239_s7 + $0x10] sm:$0xff] (!%p325_p2)   ;;  %v1030_v36 = vld [vmem:[%s1239_s7 + $0x18] sm:$0xff] (!%p325_p2)   ;;  %v1031_v37 = vld [vmem:[%s1241_s9] sm:$0xff] (!%p325_p2)  }
   0xb   : > { %947 = vmatpush3.bf16.msra.mxu0 (!%p325_p2), %v1016_v3  ;;  %v1032_v38 = vld [vmem:[%s1241_s9 + $0x8] sm:$0xff] (!%p325_p2)   ;;  %v900_v39 = vld [vmem:[%s1238_s6] ss:$0 sm:$0xff] (!%p325_p2)  ;;  %v1033_v47 = vld [vmem:[%s1241_s9 + $0x10] sm:$0xff] (!%p325_p2)  }
   0xc   : > { %959 = vmatpush3.bf16.msra.mxu1 (!%p325_p2), %v1017_v4  ;;  %948 = vmatprep.subr.bf16.mxu0 (!%p325_p2), %v1043_v1  ;;  %v1034_v48 = vld [vmem:[%s1241_s9 + $0x18] sm:$0xff] (!%p325_p2)   ;;  %v906_v49 = vld [vmem:[%s1240_s8] ss:$0 sm:$0xff] (!%p325_p2) }
   0xd   : > { %s1244_s21 = smov (!%p368_p3, %s882_s21), 3  ;;  %960 = vmatprep.subr.bf16.mxu1 %v1043_v1 }
   0xe   : > { %s885_s28 = sshll.u32 %s1244_s21, 2  ;;  %s883_s15 = sshll.u32 %s1244_s21, 3 }
   0xf   : > { %s377_s14 = scalar_lea.vmem %s1233_s1, %s885_s28  ;;  %s371_s20 = scalar_lea.vmem %s1232_s0, %s883_s15  ;;  %949 = vmatpush3.bf16.msra.mxu0 %v1018_v5 }
  0x10   : > { %v386_v9 = vld [vmem:[%s371_s20] sm:$0xff]  ;;  %v387_v10 = vld [vmem:[%s371_s20 + $0x8] sm:$0xff]  ;;  %961 = vmatpush3.bf16.msra.mxu1 %v1019_v6  ;;  %950 = vmatprep.subr.bf16.mxu0 %v1043_v1  ;;  %s383_s19 = scalar_lea.vmem %s1242_s10, %s883_s15 }
  0x11   : > { %v1022_v11 = vld [vmem:[%s377_s14] sm:$0xff]   ;;  %962 = vmatprep.subr.bf16.mxu1 %v1043_v1  ;;  %v388_v13 = vpack.c.bf16 %v387_v10, %v386_v9 }
  0x13   : > { %951 = vmatpush3.bf16.msra.mxu0 %v1020_v7 }
  0x14   : > { %963 = vmatpush3.bf16.msra.mxu1 %v1021_v8  ;;  %968 = vmatprep.subr.bf16.mxu0 %v1043_v1 }
  0x15   : > { %980 = vmatprep.subr.bf16.mxu1 %v1043_v1 }
  0x16   : > { %953 = vmatmul.mubr.msk.bf16.vlgmr.msra.gmra.mrb[0].mxu0 %vm436_vm1, %v1022_v11 }
  0x17   : > { %965 = vmatmul.mubr.msk.bf16.vlgmr.msra.gmra.mrb[0].mxu1 %vm436_vm1, %v388_v13  ;;  %969 = vmatpush3.bf16.msra.mxu0 %v1023_v12 }
  0x18   : > { %970 = vmatprep.subr.bf16.mxu0 %v1043_v1  ;;  %976 = vmatprep.mubr.msk.bf16.mxu0 %vm1044_vm0, %v1043_v1 }
  0x19   : > { %988 = vmatprep.mubr.msk.bf16.mxu1 %vm1044_vm0, %v1043_v1  ;;  %981 = vmatpush3.bf16.msra.mxu1 %v1027_v17 }
  0x1a   : > { %982 = vmatprep.subr.bf16.mxu1 %v1043_v1 }
  0x1b   : > { %971 = vmatpush3.bf16.msra.mxu0 %v1024_v14 }
  0x1c   : > { %972 = vmatprep.subr.bf16.mxu0 %v1043_v1 }
  0x1d   : > { %983 = vmatpush3.bf16.msra.mxu1 %v1028_v18 }
  0x1e   : > { %984 = vmatprep.subr.bf16.mxu1 %v1043_v1 }
  0x1f   : > { %973 = vmatpush3.bf16.msra.mxu0 %v1025_v15 }
  0x20   : > { %974 = vmatprep.subr.bf16.mxu0 %v1043_v1 }
  0x21   : > { %985 = vmatpush3.bf16.msra.mxu1 %v1029_v35 }
  0x22   : > { %986 = vmatprep.subr.bf16.mxu1 %v1043_v1 }
  0x23   : > { %975 = vmatpush3.bf16.msra.mxu0 %v1026_v16 }
  0x24   : > { %992 = vmatprep.subr.bf16.mxu0 %v1043_v1 }
  0x25   : > { %987 = vmatpush3.bf16.msra.mxu1 %v1030_v36 }
  0xe9   : > { %v474_v19 = vpop.f32.mrb[0].mxu0 }
  0xea   : > { %v542_v20 = vpop.f32.mrb[0].mxu1  ;;  %v954_v22 = vpop.f32.mrb[1].mxu0 }
  0xeb   : > { %v543_v23 = vadd.f32 %v542_v20, %v474_v19  ;;  %v966_v24 = vpop.f32.mrb[1].mxu1  ;;  %v477_v25 = vpop.f32.mrb[2].mxu0 }
  0xec   : > { %v545_v26 = vpop.f32.mrb[2].mxu1  ;;  %v955_v27 = vpop.f32.mrb[3].mxu0 }
  0xed   : > { %v556_v28 = vadd.f32 %v899_v21, %v543_v23  ;;  %v546_v29 = vadd.f32 %v545_v26, %v477_v25  ;;  %v967_v30 = vpop.f32.mrb[3].mxu1 }
  0xef   : > { %v557_v31 = vadd.f32 %v899_v21, %v546_v29  ;;  %v558_v32 = vmax.f32 %v556_v28, 0.0 }
  0xf1   : > { %v559_v33 = vmax.f32 %v557_v31, 0.0 }
  0xf3   : > { %v560_v34 = vpack.c.bf16 %v559_v33, %v558_v32 }
  0xf5   : > { %977 = vmatmul.mubr.msk.bf16.vlgmr.msra.gmra.mrb[4].mxu0 %vm436_vm1, %v560_v34 }
  0xf6   : > { %1000 = vmatprep.mubr.msk.bf16.mxu0 %vm1044_vm0, %v1043_v1  ;;  %993 = vmatpush3.bf16.msra.mxu0 %v1031_v37 }
  0xf7   : > { %994 = vmatprep.subr.bf16.mxu0 %v1043_v1 }
  0xfa   : > { %995 = vmatpush3.bf16.msra.mxu0 %v1032_v38 }
  0xfb   : > { %996 = vmatprep.subr.bf16.mxu0 %v1043_v1 }
  0xfe   : > { %997 = vmatpush3.bf16.msra.mxu0 %v1033_v47 }
  0xff   : > { %998 = vmatprep.subr.bf16.mxu0 %v1043_v1 }
 0x102   : > { %999 = vmatpush3.bf16.msra.mxu0 %v1034_v48 }
 0x1c8   : > { %v637_v40 = vpop.f32.mrb[4].mxu0 }
 0x1c9   : > { %v978_v41 = vpop.f32.mrb[5].mxu0  ;;  %v638_v43 = vadd.f32 %v900_v39, %v637_v40 }
 0x1ca   : > { %v640_v42 = vpop.f32.mrb[6].mxu0 }
 0x1cb   : > { %v641_v44 = vadd.f32 %v900_v39, %v640_v42  ;;  %v979_v45 = vpop.f32.mrb[7].mxu0 }
 0x1cd   : > { %v644_v46 = vpack.c.bf16 %v641_v44, %v638_v43 }
 0x1cf   : > { %989 = vmatmul.mubr.msk.bf16.vlgmr.msra.gmra.mrb[4].mxu1 %vm436_vm1, %v644_v46 }
 0x2a2   : > { %v721_v50 = vpop.f32.mrb[4].mxu1 }
 0x2a3   : > { %v722_v51 = vadd.f32 %v906_v49, %v721_v50  ;;  %v990_v52 = vpop.f32.mrb[5].mxu1 }
 0x2a4   : > { %v724_v53 = vpop.f32.mrb[6].mxu1 }
 0x2a5   : > { %v725_v54 = vadd.f32 %v906_v49, %v724_v53  ;;  %v991_v55 = vpop.f32.mrb[7].mxu1  ;;  %v728_v56 = vmax.f32 %v722_v51, 0.0 }
 0x2a7   : > { %v729_v57 = vmax.f32 %v725_v54, 0.0 }
 0x2a9   : > { %v730_v58 = vpack.c.bf16 %v729_v57, %v728_v56 }
 0x2ab   : > { %1001 = vmatmul.mubr.msk.bf16.vlgmr.msra.gmra.mrb[8].mxu0 %vm436_vm1, %v730_v58 }
 0x37e   : > { %v800_v59 = vpop.f32.mrb[8].mxu0 }
 0x37f   : > { %807 = vst [vmem:[%s383_s19] sm:$0xff] %v800_v59  ;;  %v1002_v60 = vpop.f32.mrb[9].mxu0 }
 0x380   : > { %v803_v61 = vpop.f32.mrb[10].mxu0 }
 0x381   : > { %808 = vst [vmem:[%s383_s19 + $0x8] sm:$0xff] %v803_v61  ;;  %v1003_v62 = vpop.f32.mrb[11].mxu0 }
 0x382 PF: > { %s20_s13 = sadd.s32 1, %s1041_s13  }
 0x383   : > { %p17_p4 = scmp.ge.s32.totalorder %s20_s13, 4  }
 0x385   :  { %19 = sbr.rel (!%p17_p4) target bundleno = 1 (0x1), region = 93 }

</bundles_post_ra>
